<compile_context>
chip_gen: v6e
topology: v6e:2x2x1
jax: 0.10.0
libtpu: 0.0.40
codegen_flags: <defaults>
</compile_context>

<pallas_src>
import functools

import jax
import jax.numpy as jnp
import numpy as np
from jax import lax
from jax.experimental import pallas as pl
from jax.experimental.pallas import tpu as pltpu

_LANES = 128
_CHUNK = 8            # sublane rows per inner iteration (1 f32 vreg per temp)
_TR_MAX = 512         # max pixel rows per grid step
_BB_MAX = 8           # max batch items packed into one grid step
_TARGET_ROWS = 256    # ~32 (8,128) chunks of VPU work per grid step
_STATIC_UNROLL_MAX = 8
_FORI_UNROLL = 4

_Q_COLS = ((1, 2), (0, 2), (0, 1))    # which columns of A multiply the Q0 pair
_Q_CHANS = ((0, 1), (2, 3), (4, 5))   # which Q0 channels feed each axis


def _ct_loss_kernel(rot_ref, trans_ref, ext_ref, p0_ref, q0_ref, occ_ref,
                    loss_ref, mask_ref, *, bb_block, chunk, n_chunks,
                    compute_dtype):
    """One grid step = (batch block, partial, pixel tile).

    rot_ref:   SMEM [B_pad*9]   (flattened row-major 3x3 per item)
    trans_ref: SMEM [B_pad*3]
    ext_ref:   SMEM [B_pad*3]
    p0_ref:    VMEM block [bb_block, 3, tr, 128]
    q0_ref:    VMEM block [bb_block, 6, tr, 128]
    occ_ref:   VMEM block [bb_block, 3, tr, 128]
    loss_ref:  VMEM block [bb_block, 1, 3, chunk, 128]   (accumulator over t)
    mask_ref:  VMEM block [bb_block, 1, 3, chunk, 128]   (accumulator over t)
    """
    t = pl.program_id(2)

    # Output blocks are revisited across the pixel-tile axis -> accumulator.
    @pl.when(t == 0)
    def _init():
        loss_ref[...] = jnp.zeros_like(loss_ref)
        mask_ref[...] = jnp.zeros_like(mask_ref)

    cdt = compute_dtype

    for bb in range(bb_block):
        gb = pl.program_id(0) * bb_block + bb   # global batch index

        # ---- scalar parameters (flat SMEM) ---------------------------------
        R = [[rot_ref[gb * 9 + 3 * i + j] for j in range(3)] for i in range(3)]
        tv = [trans_ref[gb * 3 + i] for i in range(3)]
        e = [ext_ref[gb * 3 + j] for j in range(3)]

        # Fold the (x - 0.5) * extent de-normalization into the rotation:
        #   RP0t[i]   = sum_j A[i][j] * P0[j] + cP[i]
        #   RQ0t_ax[i]= A[i][j0]*Q0[c0] + A[i][j1]*Q0[c1] + cQ[ax][i]
        A = [[R[i][j] * e[j] for j in range(3)] for i in range(3)]
        cP = [tv[i] - 0.5 * (A[i][0] + A[i][1] + A[i][2]) for i in range(3)]
        RTt = [R[0][ax] * tv[0] + R[1][ax] * tv[1] + R[2][ax] * tv[2]
               for ax in range(3)]
        cQ = [[tv[i] - 0.5 * (A[i][_Q_COLS[ax][0]] + A[i][_Q_COLS[ax][1]])
               for i in range(3)] for ax in range(3)]

        # ---- hoisted scalar->vector splats (once per batch item) ----------
        def splat(s):
            return jnp.full((chunk, _LANES), s, dtype=cdt)

        Ab = [[splat(A[i][j]) for j in range(3)] for i in range(3)]
        cPb = [splat(cP[i]) for i in range(3)]
        RTtb = [splat(RTt[ax]) for ax in range(3)]
        cQb = [[splat(cQ[ax][i]) for i in range(3)] for ax in range(3)]
        Rcb = [[splat(R[i][ax]) for i in range(3)] for ax in range(3)]

        zero = jnp.zeros((chunk, _LANES), jnp.float32)
        init_carry = (zero, zero, zero, zero, zero, zero)

        def chunk_body(c, carry):
            la = list(carry[:3])
            ma = list(carry[3:])
            row0 = c * chunk
            if not isinstance(row0, int):
                row0 = pl.multiple_of(row0, chunk)
            rows = pl.ds(row0, chunk)

            p0 = [p0_ref[bb, i, rows, :].astype(cdt) for i in range(3)]
            RP0t = [Ab[i][0] * p0[0] + Ab[i][1] * p0[1] + Ab[i][2] * p0[2]
                    + cPb[i] for i in range(3)]
            for ax in range(3):
                j0, j1 = _Q_COLS[ax]
                ch0, ch1 = _Q_CHANS[ax]
                qa = q0_ref[bb, ch0, rows, :].astype(cdt)
                qb = q0_ref[bb, ch1, rows, :].astype(cdt)
                RQ = [Ab[i][j0] * qa + Ab[i][j1] * qb + cQb[ax][i]
                      for i in range(3)]
                # d = R[:, ax] . RP0t   (per pixel)
                d = (Rcb[ax][0] * RP0t[0] + Rcb[ax][1] * RP0t[1]
                     + Rcb[ax][2] * RP0t[2])
                v0 = RTtb[ax] * RP0t[0] - d * RQ[0]
                v1 = RTtb[ax] * RP0t[1] - d * RQ[1]
                v2 = RTtb[ax] * RP0t[2] - d * RQ[2]
                nrm = jnp.sqrt((v0 * v0 + v1 * v1 + v2 * v2)
                               .astype(jnp.float32))
                occ_a = occ_ref[bb, ax, rows, :].astype(jnp.float32)
                la[ax] = la[ax] + nrm * occ_a
                ma[ax] = ma[ax] + occ_a
            return tuple(la) + tuple(ma)

        if n_chunks <= _STATIC_UNROLL_MAX:
            carry = init_carry
            for c in range(n_chunks):
                carry = chunk_body(c, carry)
        else:
            carry = lax.fori_loop(0, n_chunks, chunk_body, init_carry,
                                  unroll=_FORI_UNROLL)

        for ax in range(3):
            loss_ref[bb, 0, ax, :, :] += carry[ax]
            mask_ref[bb, 0, ax, :, :] += carry[3 + ax]


def ct_loss(pred_rots, pred_P0, pred_Q0, gt_occmask, roi_extent, pred_transes,
            compute_dtype=jnp.float32):
    """Forward pass of CT_loss (loss_weight = 1.0, applied implicitly).

    compute_dtype=jnp.bfloat16 may be passed on v6e/v7x for ~1.5-2x VALU
    throughput (accumulation stays f32); default f32 matches the reference.
    """
    if pred_rots.shape[-1] == 4:
        # TODO(synk): quaternion ([B,4]) rotations (quat2mat) not supported.
        raise NotImplementedError("CT_loss Pallas kernel requires [B,3,3] rotations")
    B, C, H, W = pred_P0.shape
    assert pred_rots.shape == (B, 3, 3)
    assert C == 3 and pred_Q0.shape[1] == 6 and gt_occmask.shape[1] == 3
    N = H * W

    # Pixel-major layout: N -> (rows, 128); rows padded to the chunk size.
    # Padded pixels / batch items carry zero data + zero occ mask, so they
    # contribute nothing (and stay finite: sqrt(0)=0).
    rows = pl.cdiv(N, _LANES)
    rows_chunk = pl.cdiv(rows, _CHUNK) * _CHUNK

    # Batch coarsening: pack several ROIs per grid step when ROIs are small.
    bb_block = max(1, min(B, _BB_MAX, _TARGET_ROWS // rows_chunk))
    b_blocks = pl.cdiv(B, bb_block)
    b_pad = b_blocks * bb_block

    tr = min(rows_chunk, _TR_MAX)
    num_tiles = pl.cdiv(rows_chunk, tr)

    # v7x: when the batch axis alone cannot feed both TensorCores, split the
    # pixel-tile axis into a leading "parallel" partials axis P.
    P = 2 if (b_blocks == 1 and num_tiles >= 2) else 1
    T = pl.cdiv(num_tiles, P)
    rows_pad = P * T * tr
    n_pad = rows_pad * _LANES

    def prep(x, c):
        # Native dtype is preserved (cast happens inside the kernel).
        x = x.reshape(B, c, N)
        pad_n = n_pad - N
        pad_b = b_pad - B
        if pad_n or pad_b:
            x = jnp.pad(x, ((0, pad_b), (0, 0), (0, pad_n)))
        return x.reshape(b_pad, c, rows_pad, _LANES)

    p0 = prep(pred_P0, 3)
    q0 = prep(pred_Q0, 6)
    occ = prep(gt_occmask, 3)

    def prep_scalar(x, k):
        x = x.reshape(B, k).astype(jnp.float32)
        if b_pad != B:
            x = jnp.pad(x, ((0, b_pad - B), (0, 0)))
        return x.reshape(b_pad * k)          # flat 1-D -> cheap SMEM footprint

    rot = prep_scalar(pred_rots, 9)
    trans = prep_scalar(pred_transes, 3)
    ext = prep_scalar(roi_extent, 3)

    kernel = functools.partial(_ct_loss_kernel, bb_block=bb_block,
                               chunk=_CHUNK, n_chunks=tr // _CHUNK,
                               compute_dtype=compute_dtype)

    pix_map = lambda b, p, t: (b, 0, p * T + t, 0)
    out_map = lambda b, p, t: (b, p, 0, 0, 0)

    loss_part, mask_part = pl.pallas_call(
        kernel,
        out_shape=(
            jax.ShapeDtypeStruct((b_pad, P, 3, _CHUNK, _LANES), jnp.float32),
            jax.ShapeDtypeStruct((b_pad, P, 3, _CHUNK, _LANES), jnp.float32),
        ),
        grid=(b_blocks, P, T),
        in_specs=[
            pl.BlockSpec(memory_space=pltpu.MemorySpace.SMEM),     # rot (flat)
            pl.BlockSpec(memory_space=pltpu.MemorySpace.SMEM),     # trans
            pl.BlockSpec(memory_space=pltpu.MemorySpace.SMEM),     # extent
            pl.BlockSpec((bb_block, 3, tr, _LANES), pix_map),      # P0
            pl.BlockSpec((bb_block, 6, tr, _LANES), pix_map),      # Q0
            pl.BlockSpec((bb_block, 3, tr, _LANES), pix_map),      # occmask
        ],
        out_specs=(
            pl.BlockSpec((bb_block, 1, 3, _CHUNK, _LANES), out_map),
            pl.BlockSpec((bb_block, 1, 3, _CHUNK, _LANES), out_map),
        ),
        compiler_params=pltpu.CompilerParams(
            dimension_semantics=("parallel", "parallel", "arbitrary")),
    )(rot, trans, ext, p0, q0, occ)

    # Cheap scalar glue (matches the PyTorch gating / normalization).
    loss_sums = loss_part.sum(axis=(1, 3, 4))     # (b_pad, 3)
    mask_sums = mask_part.sum(axis=(1, 3, 4))     # (b_pad, 3)
    per_axis_loss = loss_sums.sum(axis=0)         # (3,)
    per_axis_mask = mask_sums.sum(axis=0)         # (3,)
    thresh = jnp.float32(B * 3)
    gated = jnp.where(per_axis_mask < thresh, jnp.float32(0.0), per_axis_loss)
    total_mask = mask_sums.sum()
    loss = gated.sum() / jnp.maximum(total_mask, jnp.float32(1.0))
    return jnp.where(jnp.isfinite(loss), loss, jnp.float32(0.0))


def ct_loss_ref(pred_rots, pred_P0, pred_Q0, gt_occmask, roi_extent,
                pred_transes):
    """Pure-JAX reference (mirrors the PyTorch forward)."""
    B, _, H, W = pred_P0.shape
    N = H * W
    e = roi_extent.astype(jnp.float32)
    R = pred_rots.astype(jnp.float32)
    tr = pred_transes.astype(jnp.float32)

    p = (pred_P0.reshape(B, 3, N) - 0.5) * e[:, :, None]
    escale = jnp.stack([e[:, 1], e[:, 2], e[:, 0],
                        e[:, 2], e[:, 0], e[:, 1]], axis=1)
    q = (pred_Q0.reshape(B, 6, N) - 0.5) * escale[:, :, None]
    zero = jnp.zeros((B, 1, N), jnp.float32)
    q0x = jnp.concatenate([zero, q[:, 0:1], q[:, 1:2]], axis=1)
    q0y = jnp.concatenate([q[:, 2:3], zero, q[:, 3:4]], axis=1)
    q0z = jnp.concatenate([q[:, 4:5], q[:, 5:6], zero], axis=1)

    t = tr[:, :, None]
    RTt = jnp.einsum('bij,bi->bj', R, tr)                        # R^T t
    RP0t = jnp.einsum('bij,bjn->bin', R, p) + t
    RQs = [jnp.einsum('bij,bjn->bin', R, v) + t for v in (q0x, q0y, q0z)]
    occ = gt_occmask.reshape(B, 3, N).astype(jnp.float32)

    total = jnp.float32(0.0)
    for axis, RQ in enumerate(RQs):
        d = jnp.einsum('bi,bin->bn', R[:, :, axis], RP0t)
        vec = RTt[:, axis][:, None, None] * RP0t - d[:, None, :] * RQ
        nrm = jnp.linalg.norm(vec, axis=1)
        masked = nrm * occ[:, axis]
        total = total + jnp.where(occ[:, axis].sum() < B * 3,
                                  jnp.float32(0.0), masked.sum())
    loss = total / jnp.maximum(gt_occmask.sum().astype(jnp.float32), 1.0)
    return jnp.where(jnp.isfinite(loss), loss, jnp.float32(0.0))


if __name__ == "__main__":
    key = jax.random.PRNGKey(0)
    B, H, W = 2, 16, 16
    k1, k2, k3, k4, k5, k6 = jax.random.split(key, 6)

    pred_rots = jax.random.normal(k1, (B, 3, 3), jnp.float32)
    pred_P0 = jax.random.uniform(k2, (B, 3, H, W), jnp.float32)
    pred_Q0 = jax.random.uniform(k3, (B, 6, H, W), jnp.float32)
    gt_occmask = (jax.random.uniform(k4, (B, 3, H, W)) > 0.5).astype(jnp.float32)
    roi_extent = jax.random.uniform(k5, (B, 3), jnp.float32, 0.1, 1.0)
    pred_transes = jax.random.normal(k6, (B, 3), jnp.float32)

    out = ct_loss(pred_rots, pred_P0, pred_Q0, gt_occmask, roi_extent,
                  pred_transes)
    out = jax.block_until_ready(out)

    ref = ct_loss_ref(pred_rots, pred_P0, pred_Q0, gt_occmask, roi_extent,
                      pred_transes)
    np.testing.assert_allclose(np.asarray(out), np.asarray(ref),
                               rtol=2e-3, atol=1e-3)
    print("KERNEL_OK")
</pallas_src>

<mosaic_0001>
module attributes {stable_mosaic.version = 11 : i64} {
  func.func @_ct_loss_kernel(%arg0: i32, %arg1: i32, %arg2: i32, %arg3: memref<18xf32, #tpu.memory_space<smem>>, %arg4: memref<6xf32, #tpu.memory_space<smem>>, %arg5: memref<6xf32, #tpu.memory_space<smem>>, %arg6: memref<2x3x8x128xf32, #tpu.memory_space<vmem>>, %arg7: memref<2x6x8x128xf32, #tpu.memory_space<vmem>>, %arg8: memref<2x3x8x128xf32, #tpu.memory_space<vmem>>, %arg9: memref<2x1x3x8x128xf32, #tpu.memory_space<vmem>>, %arg10: memref<2x1x3x8x128xf32, #tpu.memory_space<vmem>>) attributes {dimension_semantics = [#tpu.dimension_semantics<parallel>, #tpu.dimension_semantics<parallel>, #tpu.dimension_semantics<arbitrary>], iteration_bounds = array<i64: 1, 1, 1>, scalar_prefetch = 0 : i64, scratch_operands = 0 : i64, tpu.core_type = #tpu.core_type<tc>, window_params = [{transform_indices = @transform_0, window_bounds = array<i64: 18>}, {transform_indices = @transform_1, window_bounds = array<i64: 6>}, {transform_indices = @transform_2, window_bounds = array<i64: 6>}, {transform_indices = @transform_3, window_bounds = array<i64: 2, 3, 8, 128>}, {transform_indices = @transform_4, window_bounds = array<i64: 2, 6, 8, 128>}, {transform_indices = @transform_5, window_bounds = array<i64: 2, 3, 8, 128>}, {transform_indices = @transform_6, window_bounds = array<i64: 2, 1, 3, 8, 128>}, {transform_indices = @transform_7, window_bounds = array<i64: 2, 1, 3, 8, 128>}]} {
    %c0_i32 = arith.constant 0 : i32
    %0 = arith.cmpi eq, %arg2, %c0_i32 : i32
    %1 = arith.extui %0 : i1 to i32
    %c0_i32_0 = arith.constant 0 : i32
    %2 = arith.cmpi ne, %1, %c0_i32_0 : i32
    scf.if %2 {
      %cst_313 = arith.constant 0.000000e+00 : f32
      %705 = vector.broadcast %cst_313 : f32 to vector<2x1x3x8x128xf32>
      %c0_314 = arith.constant 0 : index
      %c0_315 = arith.constant 0 : index
      %c0_316 = arith.constant 0 : index
      %c0_317 = arith.constant 0 : index
      %c0_318 = arith.constant 0 : index
      %706 = vector.load %arg9[%c0_314, %c0_315, %c0_316, %c0_317, %c0_318] : memref<2x1x3x8x128xf32, #tpu.memory_space<vmem>>, vector<2x1x3x8x128xf32>
      tpu.vector_store %arg9[%c0_314, %c0_315, %c0_316, %c0_317, %c0_318], %705 {strides = array<i32>} : memref<2x1x3x8x128xf32, #tpu.memory_space<vmem>>, vector<2x1x3x8x128xf32>,
      %cst_319 = arith.constant 0.000000e+00 : f32
      %707 = vector.broadcast %cst_319 : f32 to vector<2x1x3x8x128xf32>
      %c0_320 = arith.constant 0 : index
      %c0_321 = arith.constant 0 : index
      %c0_322 = arith.constant 0 : index
      %c0_323 = arith.constant 0 : index
      %c0_324 = arith.constant 0 : index
      %708 = vector.load %arg10[%c0_320, %c0_321, %c0_322, %c0_323, %c0_324] : memref<2x1x3x8x128xf32, #tpu.memory_space<vmem>>, vector<2x1x3x8x128xf32>
      tpu.vector_store %arg10[%c0_320, %c0_321, %c0_322, %c0_323, %c0_324], %707 {strides = array<i32>} : memref<2x1x3x8x128xf32, #tpu.memory_space<vmem>>, vector<2x1x3x8x128xf32>,
    } else {
    }
    %c2_i32 = arith.constant 2 : i32
    %3 = arith.muli %arg0, %c2_i32 : i32
    %c0_i32_1 = arith.constant 0 : i32
    %4 = arith.addi %3, %c0_i32_1 : i32
    %c9_i32 = arith.constant 9 : i32
    %5 = arith.muli %4, %c9_i32 : i32
    %c0_i32_2 = arith.constant 0 : i32
    %6 = arith.addi %5, %c0_i32_2 : i32
    %c0_i32_3 = arith.constant 0 : i32
    %7 = arith.addi %6, %c0_i32_3 : i32
    %8 = arith.index_cast %7 : i32 to index
    %9 = memref.load %arg3[%8] : memref<18xf32, #tpu.memory_space<smem>>
    %c9_i32_4 = arith.constant 9 : i32
    %10 = arith.muli %4, %c9_i32_4 : i32
    %c0_i32_5 = arith.constant 0 : i32
    %11 = arith.addi %10, %c0_i32_5 : i32
    %c1_i32 = arith.constant 1 : i32
    %12 = arith.addi %11, %c1_i32 : i32
    %13 = arith.index_cast %12 : i32 to index
    %14 = memref.load %arg3[%13] : memref<18xf32, #tpu.memory_space<smem>>
    %c9_i32_6 = arith.constant 9 : i32
    %15 = arith.muli %4, %c9_i32_6 : i32
    %c0_i32_7 = arith.constant 0 : i32
    %16 = arith.addi %15, %c0_i32_7 : i32
    %c2_i32_8 = arith.constant 2 : i32
    %17 = arith.addi %16, %c2_i32_8 : i32
    %18 = arith.index_cast %17 : i32 to index
    %19 = memref.load %arg3[%18] : memref<18xf32, #tpu.memory_space<smem>>
    %c9_i32_9 = arith.constant 9 : i32
    %20 = arith.muli %4, %c9_i32_9 : i32
    %c3_i32 = arith.constant 3 : i32
    %21 = arith.addi %20, %c3_i32 : i32
    %c0_i32_10 = arith.constant 0 : i32
    %22 = arith.addi %21, %c0_i32_10 : i32
    %23 = arith.index_cast %22 : i32 to index
    %24 = memref.load %arg3[%23] : memref<18xf32, #tpu.memory_space<smem>>
    %c9_i32_11 = arith.constant 9 : i32
    %25 = arith.muli %4, %c9_i32_11 : i32
    %c3_i32_12 = arith.constant 3 : i32
    %26 = arith.addi %25, %c3_i32_12 : i32
    %c1_i32_13 = arith.constant 1 : i32
    %27 = arith.addi %26, %c1_i32_13 : i32
    %28 = arith.index_cast %27 : i32 to index
    %29 = memref.load %arg3[%28] : memref<18xf32, #tpu.memory_space<smem>>
    %c9_i32_14 = arith.constant 9 : i32
    %30 = arith.muli %4, %c9_i32_14 : i32
    %c3_i32_15 = arith.constant 3 : i32
    %31 = arith.addi %30, %c3_i32_15 : i32
    %c2_i32_16 = arith.constant 2 : i32
    %32 = arith.addi %31, %c2_i32_16 : i32
    %33 = arith.index_cast %32 : i32 to index
    %34 = memref.load %arg3[%33] : memref<18xf32, #tpu.memory_space<smem>>
    %c9_i32_17 = arith.constant 9 : i32
    %35 = arith.muli %4, %c9_i32_17 : i32
    %c6_i32 = arith.constant 6 : i32
    %36 = arith.addi %35, %c6_i32 : i32
    %c0_i32_18 = arith.constant 0 : i32
    %37 = arith.addi %36, %c0_i32_18 : i32
    %38 = arith.index_cast %37 : i32 to index
    %39 = memref.load %arg3[%38] : memref<18xf32, #tpu.memory_space<smem>>
    %c9_i32_19 = arith.constant 9 : i32
    %40 = arith.muli %4, %c9_i32_19 : i32
    %c6_i32_20 = arith.constant 6 : i32
    %41 = arith.addi %40, %c6_i32_20 : i32
    %c1_i32_21 = arith.constant 1 : i32
    %42 = arith.addi %41, %c1_i32_21 : i32
    %43 = arith.index_cast %42 : i32 to index
    %44 = memref.load %arg3[%43] : memref<18xf32, #tpu.memory_space<smem>>
    %c9_i32_22 = arith.constant 9 : i32
    %45 = arith.muli %4, %c9_i32_22 : i32
    %c6_i32_23 = arith.constant 6 : i32
    %46 = arith.addi %45, %c6_i32_23 : i32
    %c2_i32_24 = arith.constant 2 : i32
    %47 = arith.addi %46, %c2_i32_24 : i32
    %48 = arith.index_cast %47 : i32 to index
    %49 = memref.load %arg3[%48] : memref<18xf32, #tpu.memory_space<smem>>
    %c3_i32_25 = arith.constant 3 : i32
    %50 = arith.muli %4, %c3_i32_25 : i32
    %c0_i32_26 = arith.constant 0 : i32
    %51 = arith.addi %50, %c0_i32_26 : i32
    %52 = arith.index_cast %51 : i32 to index
    %53 = memref.load %arg4[%52] : memref<6xf32, #tpu.memory_space<smem>>
    %c3_i32_27 = arith.constant 3 : i32
    %54 = arith.muli %4, %c3_i32_27 : i32
    %c1_i32_28 = arith.constant 1 : i32
    %55 = arith.addi %54, %c1_i32_28 : i32
    %56 = arith.index_cast %55 : i32 to index
    %57 = memref.load %arg4[%56] : memref<6xf32, #tpu.memory_space<smem>>
    %c3_i32_29 = arith.constant 3 : i32
    %58 = arith.muli %4, %c3_i32_29 : i32
    %c2_i32_30 = arith.constant 2 : i32
    %59 = arith.addi %58, %c2_i32_30 : i32
    %60 = arith.index_cast %59 : i32 to index
    %61 = memref.load %arg4[%60] : memref<6xf32, #tpu.memory_space<smem>>
    %c3_i32_31 = arith.constant 3 : i32
    %62 = arith.muli %4, %c3_i32_31 : i32
    %c0_i32_32 = arith.constant 0 : i32
    %63 = arith.addi %62, %c0_i32_32 : i32
    %64 = arith.index_cast %63 : i32 to index
    %65 = memref.load %arg5[%64] : memref<6xf32, #tpu.memory_space<smem>>
    %c3_i32_33 = arith.constant 3 : i32
    %66 = arith.muli %4, %c3_i32_33 : i32
    %c1_i32_34 = arith.constant 1 : i32
    %67 = arith.addi %66, %c1_i32_34 : i32
    %68 = arith.index_cast %67 : i32 to index
    %69 = memref.load %arg5[%68] : memref<6xf32, #tpu.memory_space<smem>>
    %c3_i32_35 = arith.constant 3 : i32
    %70 = arith.muli %4, %c3_i32_35 : i32
    %c2_i32_36 = arith.constant 2 : i32
    %71 = arith.addi %70, %c2_i32_36 : i32
    %72 = arith.index_cast %71 : i32 to index
    %73 = memref.load %arg5[%72] : memref<6xf32, #tpu.memory_space<smem>>
    %74 = arith.mulf %9, %65 : f32
    %75 = arith.mulf %14, %69 : f32
    %76 = arith.mulf %19, %73 : f32
    %77 = arith.mulf %24, %65 : f32
    %78 = arith.mulf %29, %69 : f32
    %79 = arith.mulf %34, %73 : f32
    %80 = arith.mulf %39, %65 : f32
    %81 = arith.mulf %44, %69 : f32
    %82 = arith.mulf %49, %73 : f32
    %83 = arith.addf %74, %75 : f32
    %84 = arith.addf %83, %76 : f32
    %cst = arith.constant 5.000000e-01 : f32
    %85 = arith.mulf %cst, %84 : f32
    %86 = arith.subf %53, %85 : f32
    %87 = arith.addf %77, %78 : f32
    %88 = arith.addf %87, %79 : f32
    %cst_37 = arith.constant 5.000000e-01 : f32
    %89 = arith.mulf %cst_37, %88 : f32
    %90 = arith.subf %57, %89 : f32
    %91 = arith.addf %80, %81 : f32
    %92 = arith.addf %91, %82 : f32
    %cst_38 = arith.constant 5.000000e-01 : f32
    %93 = arith.mulf %cst_38, %92 : f32
    %94 = arith.subf %61, %93 : f32
    %95 = arith.mulf %9, %53 : f32
    %96 = arith.mulf %24, %57 : f32
    %97 = arith.addf %95, %96 : f32
    %98 = arith.mulf %39, %61 : f32
    %99 = arith.addf %97, %98 : f32
    %100 = arith.mulf %14, %53 : f32
    %101 = arith.mulf %29, %57 : f32
    %102 = arith.addf %100, %101 : f32
    %103 = arith.mulf %44, %61 : f32
    %104 = arith.addf %102, %103 : f32
    %105 = arith.mulf %19, %53 : f32
    %106 = arith.mulf %34, %57 : f32
    %107 = arith.addf %105, %106 : f32
    %108 = arith.mulf %49, %61 : f32
    %109 = arith.addf %107, %108 : f32
    %110 = arith.addf %75, %76 : f32
    %cst_39 = arith.constant 5.000000e-01 : f32
    %111 = arith.mulf %cst_39, %110 : f32
    %112 = arith.subf %53, %111 : f32
    %113 = arith.addf %78, %79 : f32
    %cst_40 = arith.constant 5.000000e-01 : f32
    %114 = arith.mulf %cst_40, %113 : f32
    %115 = arith.subf %57, %114 : f32
    %116 = arith.addf %81, %82 : f32
    %cst_41 = arith.constant 5.000000e-01 : f32
    %117 = arith.mulf %cst_41, %116 : f32
    %118 = arith.subf %61, %117 : f32
    %119 = arith.addf %74, %76 : f32
    %cst_42 = arith.constant 5.000000e-01 : f32
    %120 = arith.mulf %cst_42, %119 : f32
    %121 = arith.subf %53, %120 : f32
    %122 = arith.addf %77, %79 : f32
    %cst_43 = arith.constant 5.000000e-01 : f32
    %123 = arith.mulf %cst_43, %122 : f32
    %124 = arith.subf %57, %123 : f32
    %125 = arith.addf %80, %82 : f32
    %cst_44 = arith.constant 5.000000e-01 : f32
    %126 = arith.mulf %cst_44, %125 : f32
    %127 = arith.subf %61, %126 : f32
    %128 = arith.addf %74, %75 : f32
    %cst_45 = arith.constant 5.000000e-01 : f32
    %129 = arith.mulf %cst_45, %128 : f32
    %130 = arith.subf %53, %129 : f32
    %131 = arith.addf %77, %78 : f32
    %cst_46 = arith.constant 5.000000e-01 : f32
    %132 = arith.mulf %cst_46, %131 : f32
    %133 = arith.subf %57, %132 : f32
    %134 = arith.addf %80, %81 : f32
    %cst_47 = arith.constant 5.000000e-01 : f32
    %135 = arith.mulf %cst_47, %134 : f32
    %136 = arith.subf %61, %135 : f32
    %137 = vector.broadcast %74 : f32 to vector<8x128xf32>
    %138 = vector.broadcast %75 : f32 to vector<8x128xf32>
    %139 = vector.broadcast %76 : f32 to vector<8x128xf32>
    %140 = vector.broadcast %77 : f32 to vector<8x128xf32>
    %141 = vector.broadcast %78 : f32 to vector<8x128xf32>
    %142 = vector.broadcast %79 : f32 to vector<8x128xf32>
    %143 = vector.broadcast %80 : f32 to vector<8x128xf32>
    %144 = vector.broadcast %81 : f32 to vector<8x128xf32>
    %145 = vector.broadcast %82 : f32 to vector<8x128xf32>
    %146 = vector.broadcast %86 : f32 to vector<8x128xf32>
    %147 = vector.broadcast %90 : f32 to vector<8x128xf32>
    %148 = vector.broadcast %94 : f32 to vector<8x128xf32>
    %149 = vector.broadcast %99 : f32 to vector<8x128xf32>
    %150 = vector.broadcast %104 : f32 to vector<8x128xf32>
    %151 = vector.broadcast %109 : f32 to vector<8x128xf32>
    %152 = vector.broadcast %112 : f32 to vector<8x128xf32>
    %153 = vector.broadcast %115 : f32 to vector<8x128xf32>
    %154 = vector.broadcast %118 : f32 to vector<8x128xf32>
    %155 = vector.broadcast %121 : f32 to vector<8x128xf32>
    %156 = vector.broadcast %124 : f32 to vector<8x128xf32>
    %157 = vector.broadcast %127 : f32 to vector<8x128xf32>
    %158 = vector.broadcast %130 : f32 to vector<8x128xf32>
    %159 = vector.broadcast %133 : f32 to vector<8x128xf32>
    %160 = vector.broadcast %136 : f32 to vector<8x128xf32>
    %161 = vector.broadcast %9 : f32 to vector<8x128xf32>
    %162 = vector.broadcast %24 : f32 to vector<8x128xf32>
    %163 = vector.broadcast %39 : f32 to vector<8x128xf32>
    %164 = vector.broadcast %14 : f32 to vector<8x128xf32>
    %165 = vector.broadcast %29 : f32 to vector<8x128xf32>
    %166 = vector.broadcast %44 : f32 to vector<8x128xf32>
    %167 = vector.broadcast %19 : f32 to vector<8x128xf32>
    %168 = vector.broadcast %34 : f32 to vector<8x128xf32>
    %169 = vector.broadcast %49 : f32 to vector<8x128xf32>
    %cst_48 = arith.constant 0.000000e+00 : f32
    %170 = vector.broadcast %cst_48 : f32 to vector<8x128xf32>
    %c0 = arith.constant 0 : index
    %c0_49 = arith.constant 0 : index
    %c0_50 = arith.constant 0 : index
    %c0_51 = arith.constant 0 : index
    %171 = vector.load %arg6[%c0, %c0_49, %c0_50, %c0_51] : memref<2x3x8x128xf32, #tpu.memory_space<vmem>>, vector<1x1x8x128xf32>
    %172 = vector.shape_cast %171 : vector<1x1x8x128xf32> to vector<8x128xf32>
    %c0_52 = arith.constant 0 : index
    %c1 = arith.constant 1 : index
    %c0_53 = arith.constant 0 : index
    %c0_54 = arith.constant 0 : index
    %173 = vector.load %arg6[%c0_52, %c1, %c0_53, %c0_54] : memref<2x3x8x128xf32, #tpu.memory_space<vmem>>, vector<1x1x8x128xf32>
    %174 = vector.shape_cast %173 : vector<1x1x8x128xf32> to vector<8x128xf32>
    %c0_55 = arith.constant 0 : index
    %c2 = arith.constant 2 : index
    %c0_56 = arith.constant 0 : index
    %c0_57 = arith.constant 0 : index
    %175 = vector.load %arg6[%c0_55, %c2, %c0_56, %c0_57] : memref<2x3x8x128xf32, #tpu.memory_space<vmem>>, vector<1x1x8x128xf32>
    %176 = vector.shape_cast %175 : vector<1x1x8x128xf32> to vector<8x128xf32>
    %177 = arith.mulf %137, %172 : vector<8x128xf32>
    %178 = arith.mulf %138, %174 : vector<8x128xf32>
    %179 = arith.addf %177, %178 : vector<8x128xf32>
    %180 = arith.mulf %139, %176 : vector<8x128xf32>
    %181 = arith.addf %179, %180 : vector<8x128xf32>
    %182 = arith.addf %181, %146 : vector<8x128xf32>
    %183 = arith.mulf %140, %172 : vector<8x128xf32>
    %184 = arith.mulf %141, %174 : vector<8x128xf32>
    %185 = arith.addf %183, %184 : vector<8x128xf32>
    %186 = arith.mulf %142, %176 : vector<8x128xf32>
    %187 = arith.addf %185, %186 : vector<8x128xf32>
    %188 = arith.addf %187, %147 : vector<8x128xf32>
    %189 = arith.mulf %143, %172 : vector<8x128xf32>
    %190 = arith.mulf %144, %174 : vector<8x128xf32>
    %191 = arith.addf %189, %190 : vector<8x128xf32>
    %192 = arith.mulf %145, %176 : vector<8x128xf32>
    %193 = arith.addf %191, %192 : vector<8x128xf32>
    %194 = arith.addf %193, %148 : vector<8x128xf32>
    %c0_58 = arith.constant 0 : index
    %c0_59 = arith.constant 0 : index
    %c0_60 = arith.constant 0 : index
    %c0_61 = arith.constant 0 : index
    %195 = vector.load %arg7[%c0_58, %c0_59, %c0_60, %c0_61] : memref<2x6x8x128xf32, #tpu.memory_space<vmem>>, vector<1x1x8x128xf32>
    %196 = vector.shape_cast %195 : vector<1x1x8x128xf32> to vector<8x128xf32>
    %c0_62 = arith.constant 0 : index
    %c1_63 = arith.constant 1 : index
    %c0_64 = arith.constant 0 : index
    %c0_65 = arith.constant 0 : index
    %197 = vector.load %arg7[%c0_62, %c1_63, %c0_64, %c0_65] : memref<2x6x8x128xf32, #tpu.memory_space<vmem>>, vector<1x1x8x128xf32>
    %198 = vector.shape_cast %197 : vector<1x1x8x128xf32> to vector<8x128xf32>
    %199 = arith.mulf %138, %196 : vector<8x128xf32>
    %200 = arith.mulf %139, %198 : vector<8x128xf32>
    %201 = arith.addf %199, %200 : vector<8x128xf32>
    %202 = arith.addf %201, %152 : vector<8x128xf32>
    %203 = arith.mulf %141, %196 : vector<8x128xf32>
    %204 = arith.mulf %142, %198 : vector<8x128xf32>
    %205 = arith.addf %203, %204 : vector<8x128xf32>
    %206 = arith.addf %205, %153 : vector<8x128xf32>
    %207 = arith.mulf %144, %196 : vector<8x128xf32>
    %208 = arith.mulf %145, %198 : vector<8x128xf32>
    %209 = arith.addf %207, %208 : vector<8x128xf32>
    %210 = arith.addf %209, %154 : vector<8x128xf32>
    %211 = arith.mulf %161, %182 : vector<8x128xf32>
    %212 = arith.mulf %162, %188 : vector<8x128xf32>
    %213 = arith.addf %211, %212 : vector<8x128xf32>
    %214 = arith.mulf %163, %194 : vector<8x128xf32>
    %215 = arith.addf %213, %214 : vector<8x128xf32>
    %216 = arith.mulf %149, %182 : vector<8x128xf32>
    %217 = arith.mulf %215, %202 : vector<8x128xf32>
    %218 = arith.subf %216, %217 : vector<8x128xf32>
    %219 = arith.mulf %149, %188 : vector<8x128xf32>
    %220 = arith.mulf %215, %206 : vector<8x128xf32>
    %221 = arith.subf %219, %220 : vector<8x128xf32>
    %222 = arith.mulf %149, %194 : vector<8x128xf32>
    %223 = arith.mulf %215, %210 : vector<8x128xf32>
    %224 = arith.subf %222, %223 : vector<8x128xf32>
    %225 = arith.mulf %218, %218 : vector<8x128xf32>
    %226 = arith.mulf %221, %221 : vector<8x128xf32>
    %227 = arith.addf %225, %226 : vector<8x128xf32>
    %228 = arith.mulf %224, %224 : vector<8x128xf32>
    %229 = arith.addf %227, %228 : vector<8x128xf32>
    %230 = math.sqrt %229 : vector<8x128xf32>
    %c0_66 = arith.constant 0 : index
    %c0_67 = arith.constant 0 : index
    %c0_68 = arith.constant 0 : index
    %c0_69 = arith.constant 0 : index
    %231 = vector.load %arg8[%c0_66, %c0_67, %c0_68, %c0_69] : memref<2x3x8x128xf32, #tpu.memory_space<vmem>>, vector<1x1x8x128xf32>
    %232 = vector.shape_cast %231 : vector<1x1x8x128xf32> to vector<8x128xf32>
    %233 = arith.mulf %230, %232 : vector<8x128xf32>
    %234 = arith.addf %170, %233 : vector<8x128xf32>
    %235 = arith.addf %170, %232 : vector<8x128xf32>
    %c0_70 = arith.constant 0 : index
    %c2_71 = arith.constant 2 : index
    %c0_72 = arith.constant 0 : index
    %c0_73 = arith.constant 0 : index
    %236 = vector.load %arg7[%c0_70, %c2_71, %c0_72, %c0_73] : memref<2x6x8x128xf32, #tpu.memory_space<vmem>>, vector<1x1x8x128xf32>
    %237 = vector.shape_cast %236 : vector<1x1x8x128xf32> to vector<8x128xf32>
    %c0_74 = arith.constant 0 : index
    %c3 = arith.constant 3 : index
    %c0_75 = arith.constant 0 : index
    %c0_76 = arith.constant 0 : index
    %238 = vector.load %arg7[%c0_74, %c3, %c0_75, %c0_76] : memref<2x6x8x128xf32, #tpu.memory_space<vmem>>, vector<1x1x8x128xf32>
    %239 = vector.shape_cast %238 : vector<1x1x8x128xf32> to vector<8x128xf32>
    %240 = arith.mulf %137, %237 : vector<8x128xf32>
    %241 = arith.mulf %139, %239 : vector<8x128xf32>
    %242 = arith.addf %240, %241 : vector<8x128xf32>
    %243 = arith.addf %242, %155 : vector<8x128xf32>
    %244 = arith.mulf %140, %237 : vector<8x128xf32>
    %245 = arith.mulf %142, %239 : vector<8x128xf32>
    %246 = arith.addf %244, %245 : vector<8x128xf32>
    %247 = arith.addf %246, %156 : vector<8x128xf32>
    %248 = arith.mulf %143, %237 : vector<8x128xf32>
    %249 = arith.mulf %145, %239 : vector<8x128xf32>
    %250 = arith.addf %248, %249 : vector<8x128xf32>
    %251 = arith.addf %250, %157 : vector<8x128xf32>
    %252 = arith.mulf %164, %182 : vector<8x128xf32>
    %253 = arith.mulf %165, %188 : vector<8x128xf32>
    %254 = arith.addf %252, %253 : vector<8x128xf32>
    %255 = arith.mulf %166, %194 : vector<8x128xf32>
    %256 = arith.addf %254, %255 : vector<8x128xf32>
    %257 = arith.mulf %150, %182 : vector<8x128xf32>
    %258 = arith.mulf %256, %243 : vector<8x128xf32>
    %259 = arith.subf %257, %258 : vector<8x128xf32>
    %260 = arith.mulf %150, %188 : vector<8x128xf32>
    %261 = arith.mulf %256, %247 : vector<8x128xf32>
    %262 = arith.subf %260, %261 : vector<8x128xf32>
    %263 = arith.mulf %150, %194 : vector<8x128xf32>
    %264 = arith.mulf %256, %251 : vector<8x128xf32>
    %265 = arith.subf %263, %264 : vector<8x128xf32>
    %266 = arith.mulf %259, %259 : vector<8x128xf32>
    %267 = arith.mulf %262, %262 : vector<8x128xf32>
    %268 = arith.addf %266, %267 : vector<8x128xf32>
    %269 = arith.mulf %265, %265 : vector<8x128xf32>
    %270 = arith.addf %268, %269 : vector<8x128xf32>
    %271 = math.sqrt %270 : vector<8x128xf32>
    %c0_77 = arith.constant 0 : index
    %c1_78 = arith.constant 1 : index
    %c0_79 = arith.constant 0 : index
    %c0_80 = arith.constant 0 : index
    %272 = vector.load %arg8[%c0_77, %c1_78, %c0_79, %c0_80] : memref<2x3x8x128xf32, #tpu.memory_space<vmem>>, vector<1x1x8x128xf32>
    %273 = vector.shape_cast %272 : vector<1x1x8x128xf32> to vector<8x128xf32>
    %274 = arith.mulf %271, %273 : vector<8x128xf32>
    %275 = arith.addf %170, %274 : vector<8x128xf32>
    %276 = arith.addf %170, %273 : vector<8x128xf32>
    %c0_81 = arith.constant 0 : index
    %c4 = arith.constant 4 : index
    %c0_82 = arith.constant 0 : index
    %c0_83 = arith.constant 0 : index
    %277 = vector.load %arg7[%c0_81, %c4, %c0_82, %c0_83] : memref<2x6x8x128xf32, #tpu.memory_space<vmem>>, vector<1x1x8x128xf32>
    %278 = vector.shape_cast %277 : vector<1x1x8x128xf32> to vector<8x128xf32>
    %c0_84 = arith.constant 0 : index
    %c5 = arith.constant 5 : index
    %c0_85 = arith.constant 0 : index
    %c0_86 = arith.constant 0 : index
    %279 = vector.load %arg7[%c0_84, %c5, %c0_85, %c0_86] : memref<2x6x8x128xf32, #tpu.memory_space<vmem>>, vector<1x1x8x128xf32>
    %280 = vector.shape_cast %279 : vector<1x1x8x128xf32> to vector<8x128xf32>
    %281 = arith.mulf %137, %278 : vector<8x128xf32>
    %282 = arith.mulf %138, %280 : vector<8x128xf32>
    %283 = arith.addf %281, %282 : vector<8x128xf32>
    %284 = arith.addf %283, %158 : vector<8x128xf32>
    %285 = arith.mulf %140, %278 : vector<8x128xf32>
    %286 = arith.mulf %141, %280 : vector<8x128xf32>
    %287 = arith.addf %285, %286 : vector<8x128xf32>
    %288 = arith.addf %287, %159 : vector<8x128xf32>
    %289 = arith.mulf %143, %278 : vector<8x128xf32>
    %290 = arith.mulf %144, %280 : vector<8x128xf32>
    %291 = arith.addf %289, %290 : vector<8x128xf32>
    %292 = arith.addf %291, %160 : vector<8x128xf32>
    %293 = arith.mulf %167, %182 : vector<8x128xf32>
    %294 = arith.mulf %168, %188 : vector<8x128xf32>
    %295 = arith.addf %293, %294 : vector<8x128xf32>
    %296 = arith.mulf %169, %194 : vector<8x128xf32>
    %297 = arith.addf %295, %296 : vector<8x128xf32>
    %298 = arith.mulf %151, %182 : vector<8x128xf32>
    %299 = arith.mulf %297, %284 : vector<8x128xf32>
    %300 = arith.subf %298, %299 : vector<8x128xf32>
    %301 = arith.mulf %151, %188 : vector<8x128xf32>
    %302 = arith.mulf %297, %288 : vector<8x128xf32>
    %303 = arith.subf %301, %302 : vector<8x128xf32>
    %304 = arith.mulf %151, %194 : vector<8x128xf32>
    %305 = arith.mulf %297, %292 : vector<8x128xf32>
    %306 = arith.subf %304, %305 : vector<8x128xf32>
    %307 = arith.mulf %300, %300 : vector<8x128xf32>
    %308 = arith.mulf %303, %303 : vector<8x128xf32>
    %309 = arith.addf %307, %308 : vector<8x128xf32>
    %310 = arith.mulf %306, %306 : vector<8x128xf32>
    %311 = arith.addf %309, %310 : vector<8x128xf32>
    %312 = math.sqrt %311 : vector<8x128xf32>
    %c0_87 = arith.constant 0 : index
    %c2_88 = arith.constant 2 : index
    %c0_89 = arith.constant 0 : index
    %c0_90 = arith.constant 0 : index
    %313 = vector.load %arg8[%c0_87, %c2_88, %c0_89, %c0_90] : memref<2x3x8x128xf32, #tpu.memory_space<vmem>>, vector<1x1x8x128xf32>
    %314 = vector.shape_cast %313 : vector<1x1x8x128xf32> to vector<8x128xf32>
    %315 = arith.mulf %312, %314 : vector<8x128xf32>
    %316 = arith.addf %170, %315 : vector<8x128xf32>
    %317 = arith.addf %170, %314 : vector<8x128xf32>
    %c0_91 = arith.constant 0 : index
    %c0_92 = arith.constant 0 : index
    %c0_93 = arith.constant 0 : index
    %c0_94 = arith.constant 0 : index
    %c0_95 = arith.constant 0 : index
    %318 = vector.load %arg9[%c0_91, %c0_92, %c0_93, %c0_94, %c0_95] : memref<2x1x3x8x128xf32, #tpu.memory_space<vmem>>, vector<1x1x1x8x128xf32>
    %319 = vector.shape_cast %318 : vector<1x1x1x8x128xf32> to vector<8x128xf32>
    %320 = arith.addf %319, %234 : vector<8x128xf32>
    %c0_96 = arith.constant 0 : index
    %c0_97 = arith.constant 0 : index
    %c0_98 = arith.constant 0 : index
    %c0_99 = arith.constant 0 : index
    %c0_100 = arith.constant 0 : index
    %321 = vector.load %arg9[%c0_96, %c0_97, %c0_98, %c0_99, %c0_100] : memref<2x1x3x8x128xf32, #tpu.memory_space<vmem>>, vector<1x1x1x8x128xf32>
    %322 = vector.shape_cast %321 : vector<1x1x1x8x128xf32> to vector<8x128xf32>
    %323 = vector.shape_cast %320 : vector<8x128xf32> to vector<1x1x1x8x128xf32>
    tpu.vector_store %arg9[%c0_96, %c0_97, %c0_98, %c0_99, %c0_100], %323 {strides = array<i32>} : memref<2x1x3x8x128xf32, #tpu.memory_space<vmem>>, vector<1x1x1x8x128xf32>,
    %c0_101 = arith.constant 0 : index
    %c0_102 = arith.constant 0 : index
    %c0_103 = arith.constant 0 : index
    %c0_104 = arith.constant 0 : index
    %c0_105 = arith.constant 0 : index
    %324 = vector.load %arg10[%c0_101, %c0_102, %c0_103, %c0_104, %c0_105] : memref<2x1x3x8x128xf32, #tpu.memory_space<vmem>>, vector<1x1x1x8x128xf32>
    %325 = vector.shape_cast %324 : vector<1x1x1x8x128xf32> to vector<8x128xf32>
    %326 = arith.addf %325, %235 : vector<8x128xf32>
    %c0_106 = arith.constant 0 : index
    %c0_107 = arith.constant 0 : index
    %c0_108 = arith.constant 0 : index
    %c0_109 = arith.constant 0 : index
    %c0_110 = arith.constant 0 : index
    %327 = vector.load %arg10[%c0_106, %c0_107, %c0_108, %c0_109, %c0_110] : memref<2x1x3x8x128xf32, #tpu.memory_space<vmem>>, vector<1x1x1x8x128xf32>
    %328 = vector.shape_cast %327 : vector<1x1x1x8x128xf32> to vector<8x128xf32>
    %329 = vector.shape_cast %326 : vector<8x128xf32> to vector<1x1x1x8x128xf32>
    tpu.vector_store %arg10[%c0_106, %c0_107, %c0_108, %c0_109, %c0_110], %329 {strides = array<i32>} : memref<2x1x3x8x128xf32, #tpu.memory_space<vmem>>, vector<1x1x1x8x128xf32>,
    %c0_111 = arith.constant 0 : index
    %c0_112 = arith.constant 0 : index
    %c1_113 = arith.constant 1 : index
    %c0_114 = arith.constant 0 : index
    %c0_115 = arith.constant 0 : index
    %330 = vector.load %arg9[%c0_111, %c0_112, %c1_113, %c0_114, %c0_115] : memref<2x1x3x8x128xf32, #tpu.memory_space<vmem>>, vector<1x1x1x8x128xf32>
    %331 = vector.shape_cast %330 : vector<1x1x1x8x128xf32> to vector<8x128xf32>
    %332 = arith.addf %331, %275 : vector<8x128xf32>
    %c0_116 = arith.constant 0 : index
    %c0_117 = arith.constant 0 : index
    %c1_118 = arith.constant 1 : index
    %c0_119 = arith.constant 0 : index
    %c0_120 = arith.constant 0 : index
    %333 = vector.load %arg9[%c0_116, %c0_117, %c1_118, %c0_119, %c0_120] : memref<2x1x3x8x128xf32, #tpu.memory_space<vmem>>, vector<1x1x1x8x128xf32>
    %334 = vector.shape_cast %333 : vector<1x1x1x8x128xf32> to vector<8x128xf32>
    %335 = vector.shape_cast %332 : vector<8x128xf32> to vector<1x1x1x8x128xf32>
    tpu.vector_store %arg9[%c0_116, %c0_117, %c1_118, %c0_119, %c0_120], %335 {strides = array<i32>} : memref<2x1x3x8x128xf32, #tpu.memory_space<vmem>>, vector<1x1x1x8x128xf32>,
    %c0_121 = arith.constant 0 : index
    %c0_122 = arith.constant 0 : index
    %c1_123 = arith.constant 1 : index
    %c0_124 = arith.constant 0 : index
    %c0_125 = arith.constant 0 : index
    %336 = vector.load %arg10[%c0_121, %c0_122, %c1_123, %c0_124, %c0_125] : memref<2x1x3x8x128xf32, #tpu.memory_space<vmem>>, vector<1x1x1x8x128xf32>
    %337 = vector.shape_cast %336 : vector<1x1x1x8x128xf32> to vector<8x128xf32>
    %338 = arith.addf %337, %276 : vector<8x128xf32>
    %c0_126 = arith.constant 0 : index
    %c0_127 = arith.constant 0 : index
    %c1_128 = arith.constant 1 : index
    %c0_129 = arith.constant 0 : index
    %c0_130 = arith.constant 0 : index
    %339 = vector.load %arg10[%c0_126, %c0_127, %c1_128, %c0_129, %c0_130] : memref<2x1x3x8x128xf32, #tpu.memory_space<vmem>>, vector<1x1x1x8x128xf32>
    %340 = vector.shape_cast %339 : vector<1x1x1x8x128xf32> to vector<8x128xf32>
    %341 = vector.shape_cast %338 : vector<8x128xf32> to vector<1x1x1x8x128xf32>
    tpu.vector_store %arg10[%c0_126, %c0_127, %c1_128, %c0_129, %c0_130], %341 {strides = array<i32>} : memref<2x1x3x8x128xf32, #tpu.memory_space<vmem>>, vector<1x1x1x8x128xf32>,
    %c0_131 = arith.constant 0 : index
    %c0_132 = arith.constant 0 : index
    %c2_133 = arith.constant 2 : index
    %c0_134 = arith.constant 0 : index
    %c0_135 = arith.constant 0 : index
    %342 = vector.load %arg9[%c0_131, %c0_132, %c2_133, %c0_134, %c0_135] : memref<2x1x3x8x128xf32, #tpu.memory_space<vmem>>, vector<1x1x1x8x128xf32>
    %343 = vector.shape_cast %342 : vector<1x1x1x8x128xf32> to vector<8x128xf32>
    %344 = arith.addf %343, %316 : vector<8x128xf32>
    %c0_136 = arith.constant 0 : index
    %c0_137 = arith.constant 0 : index
    %c2_138 = arith.constant 2 : index
    %c0_139 = arith.constant 0 : index
    %c0_140 = arith.constant 0 : index
    %345 = vector.load %arg9[%c0_136, %c0_137, %c2_138, %c0_139, %c0_140] : memref<2x1x3x8x128xf32, #tpu.memory_space<vmem>>, vector<1x1x1x8x128xf32>
    %346 = vector.shape_cast %345 : vector<1x1x1x8x128xf32> to vector<8x128xf32>
    %347 = vector.shape_cast %344 : vector<8x128xf32> to vector<1x1x1x8x128xf32>
    tpu.vector_store %arg9[%c0_136, %c0_137, %c2_138, %c0_139, %c0_140], %347 {strides = array<i32>} : memref<2x1x3x8x128xf32, #tpu.memory_space<vmem>>, vector<1x1x1x8x128xf32>,
    %c0_141 = arith.constant 0 : index
    %c0_142 = arith.constant 0 : index
    %c2_143 = arith.constant 2 : index
    %c0_144 = arith.constant 0 : index
    %c0_145 = arith.constant 0 : index
    %348 = vector.load %arg10[%c0_141, %c0_142, %c2_143, %c0_144, %c0_145] : memref<2x1x3x8x128xf32, #tpu.memory_space<vmem>>, vector<1x1x1x8x128xf32>
    %349 = vector.shape_cast %348 : vector<1x1x1x8x128xf32> to vector<8x128xf32>
    %350 = arith.addf %349, %317 : vector<8x128xf32>
    %c0_146 = arith.constant 0 : index
    %c0_147 = arith.constant 0 : index
    %c2_148 = arith.constant 2 : index
    %c0_149 = arith.constant 0 : index
    %c0_150 = arith.constant 0 : index
    %351 = vector.load %arg10[%c0_146, %c0_147, %c2_148, %c0_149, %c0_150] : memref<2x1x3x8x128xf32, #tpu.memory_space<vmem>>, vector<1x1x1x8x128xf32>
    %352 = vector.shape_cast %351 : vector<1x1x1x8x128xf32> to vector<8x128xf32>
    %353 = vector.shape_cast %350 : vector<8x128xf32> to vector<1x1x1x8x128xf32>
    tpu.vector_store %arg10[%c0_146, %c0_147, %c2_148, %c0_149, %c0_150], %353 {strides = array<i32>} : memref<2x1x3x8x128xf32, #tpu.memory_space<vmem>>, vector<1x1x1x8x128xf32>,
    %c2_i32_151 = arith.constant 2 : i32
    %354 = arith.muli %arg0, %c2_i32_151 : i32
    %c1_i32_152 = arith.constant 1 : i32
    %355 = arith.addi %354, %c1_i32_152 : i32
    %c9_i32_153 = arith.constant 9 : i32
    %356 = arith.muli %355, %c9_i32_153 : i32
    %c0_i32_154 = arith.constant 0 : i32
    %357 = arith.addi %356, %c0_i32_154 : i32
    %c0_i32_155 = arith.constant 0 : i32
    %358 = arith.addi %357, %c0_i32_155 : i32
    %359 = arith.index_cast %358 : i32 to index
    %360 = memref.load %arg3[%359] : memref<18xf32, #tpu.memory_space<smem>>
    %c9_i32_156 = arith.constant 9 : i32
    %361 = arith.muli %355, %c9_i32_156 : i32
    %c0_i32_157 = arith.constant 0 : i32
    %362 = arith.addi %361, %c0_i32_157 : i32
    %c1_i32_158 = arith.constant 1 : i32
    %363 = arith.addi %362, %c1_i32_158 : i32
    %364 = arith.index_cast %363 : i32 to index
    %365 = memref.load %arg3[%364] : memref<18xf32, #tpu.memory_space<smem>>
    %c9_i32_159 = arith.constant 9 : i32
    %366 = arith.muli %355, %c9_i32_159 : i32
    %c0_i32_160 = arith.constant 0 : i32
    %367 = arith.addi %366, %c0_i32_160 : i32
    %c2_i32_161 = arith.constant 2 : i32
    %368 = arith.addi %367, %c2_i32_161 : i32
    %369 = arith.index_cast %368 : i32 to index
    %370 = memref.load %arg3[%369] : memref<18xf32, #tpu.memory_space<smem>>
    %c9_i32_162 = arith.constant 9 : i32
    %371 = arith.muli %355, %c9_i32_162 : i32
    %c3_i32_163 = arith.constant 3 : i32
    %372 = arith.addi %371, %c3_i32_163 : i32
    %c0_i32_164 = arith.constant 0 : i32
    %373 = arith.addi %372, %c0_i32_164 : i32
    %374 = arith.index_cast %373 : i32 to index
    %375 = memref.load %arg3[%374] : memref<18xf32, #tpu.memory_space<smem>>
    %c9_i32_165 = arith.constant 9 : i32
    %376 = arith.muli %355, %c9_i32_165 : i32
    %c3_i32_166 = arith.constant 3 : i32
    %377 = arith.addi %376, %c3_i32_166 : i32
    %c1_i32_167 = arith.constant 1 : i32
    %378 = arith.addi %377, %c1_i32_167 : i32
    %379 = arith.index_cast %378 : i32 to index
    %380 = memref.load %arg3[%379] : memref<18xf32, #tpu.memory_space<smem>>
    %c9_i32_168 = arith.constant 9 : i32
    %381 = arith.muli %355, %c9_i32_168 : i32
    %c3_i32_169 = arith.constant 3 : i32
    %382 = arith.addi %381, %c3_i32_169 : i32
    %c2_i32_170 = arith.constant 2 : i32
    %383 = arith.addi %382, %c2_i32_170 : i32
    %384 = arith.index_cast %383 : i32 to index
    %385 = memref.load %arg3[%384] : memref<18xf32, #tpu.memory_space<smem>>
    %c9_i32_171 = arith.constant 9 : i32
    %386 = arith.muli %355, %c9_i32_171 : i32
    %c6_i32_172 = arith.constant 6 : i32
    %387 = arith.addi %386, %c6_i32_172 : i32
    %c0_i32_173 = arith.constant 0 : i32
    %388 = arith.addi %387, %c0_i32_173 : i32
    %389 = arith.index_cast %388 : i32 to index
    %390 = memref.load %arg3[%389] : memref<18xf32, #tpu.memory_space<smem>>
    %c9_i32_174 = arith.constant 9 : i32
    %391 = arith.muli %355, %c9_i32_174 : i32
    %c6_i32_175 = arith.constant 6 : i32
    %392 = arith.addi %391, %c6_i32_175 : i32
    %c1_i32_176 = arith.constant 1 : i32
    %393 = arith.addi %392, %c1_i32_176 : i32
    %394 = arith.index_cast %393 : i32 to index
    %395 = memref.load %arg3[%394] : memref<18xf32, #tpu.memory_space<smem>>
    %c9_i32_177 = arith.constant 9 : i32
    %396 = arith.muli %355, %c9_i32_177 : i32
    %c6_i32_178 = arith.constant 6 : i32
    %397 = arith.addi %396, %c6_i32_178 : i32
    %c2_i32_179 = arith.constant 2 : i32
    %398 = arith.addi %397, %c2_i32_179 : i32
    %399 = arith.index_cast %398 : i32 to index
    %400 = memref.load %arg3[%399] : memref<18xf32, #tpu.memory_space<smem>>
    %c3_i32_180 = arith.constant 3 : i32
    %401 = arith.muli %355, %c3_i32_180 : i32
    %c0_i32_181 = arith.constant 0 : i32
    %402 = arith.addi %401, %c0_i32_181 : i32
    %403 = arith.index_cast %402 : i32 to index
    %404 = memref.load %arg4[%403] : memref<6xf32, #tpu.memory_space<smem>>
    %c3_i32_182 = arith.constant 3 : i32
    %405 = arith.muli %355, %c3_i32_182 : i32
    %c1_i32_183 = arith.constant 1 : i32
    %406 = arith.addi %405, %c1_i32_183 : i32
    %407 = arith.index_cast %406 : i32 to index
    %408 = memref.load %arg4[%407] : memref<6xf32, #tpu.memory_space<smem>>
    %c3_i32_184 = arith.constant 3 : i32
    %409 = arith.muli %355, %c3_i32_184 : i32
    %c2_i32_185 = arith.constant 2 : i32
    %410 = arith.addi %409, %c2_i32_185 : i32
    %411 = arith.index_cast %410 : i32 to index
    %412 = memref.load %arg4[%411] : memref<6xf32, #tpu.memory_space<smem>>
    %c3_i32_186 = arith.constant 3 : i32
    %413 = arith.muli %355, %c3_i32_186 : i32
    %c0_i32_187 = arith.constant 0 : i32
    %414 = arith.addi %413, %c0_i32_187 : i32
    %415 = arith.index_cast %414 : i32 to index
    %416 = memref.load %arg5[%415] : memref<6xf32, #tpu.memory_space<smem>>
    %c3_i32_188 = arith.constant 3 : i32
    %417 = arith.muli %355, %c3_i32_188 : i32
    %c1_i32_189 = arith.constant 1 : i32
    %418 = arith.addi %417, %c1_i32_189 : i32
    %419 = arith.index_cast %418 : i32 to index
    %420 = memref.load %arg5[%419] : memref<6xf32, #tpu.memory_space<smem>>
    %c3_i32_190 = arith.constant 3 : i32
    %421 = arith.muli %355, %c3_i32_190 : i32
    %c2_i32_191 = arith.constant 2 : i32
    %422 = arith.addi %421, %c2_i32_191 : i32
    %423 = arith.index_cast %422 : i32 to index
    %424 = memref.load %arg5[%423] : memref<6xf32, #tpu.memory_space<smem>>
    %425 = arith.mulf %360, %416 : f32
    %426 = arith.mulf %365, %420 : f32
    %427 = arith.mulf %370, %424 : f32
    %428 = arith.mulf %375, %416 : f32
    %429 = arith.mulf %380, %420 : f32
    %430 = arith.mulf %385, %424 : f32
    %431 = arith.mulf %390, %416 : f32
    %432 = arith.mulf %395, %420 : f32
    %433 = arith.mulf %400, %424 : f32
    %434 = arith.addf %425, %426 : f32
    %435 = arith.addf %434, %427 : f32
    %cst_192 = arith.constant 5.000000e-01 : f32
    %436 = arith.mulf %cst_192, %435 : f32
    %437 = arith.subf %404, %436 : f32
    %438 = arith.addf %428, %429 : f32
    %439 = arith.addf %438, %430 : f32
    %cst_193 = arith.constant 5.000000e-01 : f32
    %440 = arith.mulf %cst_193, %439 : f32
    %441 = arith.subf %408, %440 : f32
    %442 = arith.addf %431, %432 : f32
    %443 = arith.addf %442, %433 : f32
    %cst_194 = arith.constant 5.000000e-01 : f32
    %444 = arith.mulf %cst_194, %443 : f32
    %445 = arith.subf %412, %444 : f32
    %446 = arith.mulf %360, %404 : f32
    %447 = arith.mulf %375, %408 : f32
    %448 = arith.addf %446, %447 : f32
    %449 = arith.mulf %390, %412 : f32
    %450 = arith.addf %448, %449 : f32
    %451 = arith.mulf %365, %404 : f32
    %452 = arith.mulf %380, %408 : f32
    %453 = arith.addf %451, %452 : f32
    %454 = arith.mulf %395, %412 : f32
    %455 = arith.addf %453, %454 : f32
    %456 = arith.mulf %370, %404 : f32
    %457 = arith.mulf %385, %408 : f32
    %458 = arith.addf %456, %457 : f32
    %459 = arith.mulf %400, %412 : f32
    %460 = arith.addf %458, %459 : f32
    %461 = arith.addf %426, %427 : f32
    %cst_195 = arith.constant 5.000000e-01 : f32
    %462 = arith.mulf %cst_195, %461 : f32
    %463 = arith.subf %404, %462 : f32
    %464 = arith.addf %429, %430 : f32
    %cst_196 = arith.constant 5.000000e-01 : f32
    %465 = arith.mulf %cst_196, %464 : f32
    %466 = arith.subf %408, %465 : f32
    %467 = arith.addf %432, %433 : f32
    %cst_197 = arith.constant 5.000000e-01 : f32
    %468 = arith.mulf %cst_197, %467 : f32
    %469 = arith.subf %412, %468 : f32
    %470 = arith.addf %425, %427 : f32
    %cst_198 = arith.constant 5.000000e-01 : f32
    %471 = arith.mulf %cst_198, %470 : f32
    %472 = arith.subf %404, %471 : f32
    %473 = arith.addf %428, %430 : f32
    %cst_199 = arith.constant 5.000000e-01 : f32
    %474 = arith.mulf %cst_199, %473 : f32
    %475 = arith.subf %408, %474 : f32
    %476 = arith.addf %431, %433 : f32
    %cst_200 = arith.constant 5.000000e-01 : f32
    %477 = arith.mulf %cst_200, %476 : f32
    %478 = arith.subf %412, %477 : f32
    %479 = arith.addf %425, %426 : f32
    %cst_201 = arith.constant 5.000000e-01 : f32
    %480 = arith.mulf %cst_201, %479 : f32
    %481 = arith.subf %404, %480 : f32
    %482 = arith.addf %428, %429 : f32
    %cst_202 = arith.constant 5.000000e-01 : f32
    %483 = arith.mulf %cst_202, %482 : f32
    %484 = arith.subf %408, %483 : f32
    %485 = arith.addf %431, %432 : f32
    %cst_203 = arith.constant 5.000000e-01 : f32
    %486 = arith.mulf %cst_203, %485 : f32
    %487 = arith.subf %412, %486 : f32
    %488 = vector.broadcast %425 : f32 to vector<8x128xf32>
    %489 = vector.broadcast %426 : f32 to vector<8x128xf32>
    %490 = vector.broadcast %427 : f32 to vector<8x128xf32>
    %491 = vector.broadcast %428 : f32 to vector<8x128xf32>
    %492 = vector.broadcast %429 : f32 to vector<8x128xf32>
    %493 = vector.broadcast %430 : f32 to vector<8x128xf32>
    %494 = vector.broadcast %431 : f32 to vector<8x128xf32>
    %495 = vector.broadcast %432 : f32 to vector<8x128xf32>
    %496 = vector.broadcast %433 : f32 to vector<8x128xf32>
    %497 = vector.broadcast %437 : f32 to vector<8x128xf32>
    %498 = vector.broadcast %441 : f32 to vector<8x128xf32>
    %499 = vector.broadcast %445 : f32 to vector<8x128xf32>
    %500 = vector.broadcast %450 : f32 to vector<8x128xf32>
    %501 = vector.broadcast %455 : f32 to vector<8x128xf32>
    %502 = vector.broadcast %460 : f32 to vector<8x128xf32>
    %503 = vector.broadcast %463 : f32 to vector<8x128xf32>
    %504 = vector.broadcast %466 : f32 to vector<8x128xf32>
    %505 = vector.broadcast %469 : f32 to vector<8x128xf32>
    %506 = vector.broadcast %472 : f32 to vector<8x128xf32>
    %507 = vector.broadcast %475 : f32 to vector<8x128xf32>
    %508 = vector.broadcast %478 : f32 to vector<8x128xf32>
    %509 = vector.broadcast %481 : f32 to vector<8x128xf32>
    %510 = vector.broadcast %484 : f32 to vector<8x128xf32>
    %511 = vector.broadcast %487 : f32 to vector<8x128xf32>
    %512 = vector.broadcast %360 : f32 to vector<8x128xf32>
    %513 = vector.broadcast %375 : f32 to vector<8x128xf32>
    %514 = vector.broadcast %390 : f32 to vector<8x128xf32>
    %515 = vector.broadcast %365 : f32 to vector<8x128xf32>
    %516 = vector.broadcast %380 : f32 to vector<8x128xf32>
    %517 = vector.broadcast %395 : f32 to vector<8x128xf32>
    %518 = vector.broadcast %370 : f32 to vector<8x128xf32>
    %519 = vector.broadcast %385 : f32 to vector<8x128xf32>
    %520 = vector.broadcast %400 : f32 to vector<8x128xf32>
    %cst_204 = arith.constant 0.000000e+00 : f32
    %521 = vector.broadcast %cst_204 : f32 to vector<8x128xf32>
    %c1_205 = arith.constant 1 : index
    %c0_206 = arith.constant 0 : index
    %c0_207 = arith.constant 0 : index
    %c0_208 = arith.constant 0 : index
    %522 = vector.load %arg6[%c1_205, %c0_206, %c0_207, %c0_208] : memref<2x3x8x128xf32, #tpu.memory_space<vmem>>, vector<1x1x8x128xf32>
    %523 = vector.shape_cast %522 : vector<1x1x8x128xf32> to vector<8x128xf32>
    %c1_209 = arith.constant 1 : index
    %c1_210 = arith.constant 1 : index
    %c0_211 = arith.constant 0 : index
    %c0_212 = arith.constant 0 : index
    %524 = vector.load %arg6[%c1_209, %c1_210, %c0_211, %c0_212] : memref<2x3x8x128xf32, #tpu.memory_space<vmem>>, vector<1x1x8x128xf32>
    %525 = vector.shape_cast %524 : vector<1x1x8x128xf32> to vector<8x128xf32>
    %c1_213 = arith.constant 1 : index
    %c2_214 = arith.constant 2 : index
    %c0_215 = arith.constant 0 : index
    %c0_216 = arith.constant 0 : index
    %526 = vector.load %arg6[%c1_213, %c2_214, %c0_215, %c0_216] : memref<2x3x8x128xf32, #tpu.memory_space<vmem>>, vector<1x1x8x128xf32>
    %527 = vector.shape_cast %526 : vector<1x1x8x128xf32> to vector<8x128xf32>
    %528 = arith.mulf %488, %523 : vector<8x128xf32>
    %529 = arith.mulf %489, %525 : vector<8x128xf32>
    %530 = arith.addf %528, %529 : vector<8x128xf32>
    %531 = arith.mulf %490, %527 : vector<8x128xf32>
    %532 = arith.addf %530, %531 : vector<8x128xf32>
    %533 = arith.addf %532, %497 : vector<8x128xf32>
    %534 = arith.mulf %491, %523 : vector<8x128xf32>
    %535 = arith.mulf %492, %525 : vector<8x128xf32>
    %536 = arith.addf %534, %535 : vector<8x128xf32>
    %537 = arith.mulf %493, %527 : vector<8x128xf32>
    %538 = arith.addf %536, %537 : vector<8x128xf32>
    %539 = arith.addf %538, %498 : vector<8x128xf32>
    %540 = arith.mulf %494, %523 : vector<8x128xf32>
    %541 = arith.mulf %495, %525 : vector<8x128xf32>
    %542 = arith.addf %540, %541 : vector<8x128xf32>
    %543 = arith.mulf %496, %527 : vector<8x128xf32>
    %544 = arith.addf %542, %543 : vector<8x128xf32>
    %545 = arith.addf %544, %499 : vector<8x128xf32>
    %c1_217 = arith.constant 1 : index
    %c0_218 = arith.constant 0 : index
    %c0_219 = arith.constant 0 : index
    %c0_220 = arith.constant 0 : index
    %546 = vector.load %arg7[%c1_217, %c0_218, %c0_219, %c0_220] : memref<2x6x8x128xf32, #tpu.memory_space<vmem>>, vector<1x1x8x128xf32>
    %547 = vector.shape_cast %546 : vector<1x1x8x128xf32> to vector<8x128xf32>
    %c1_221 = arith.constant 1 : index
    %c1_222 = arith.constant 1 : index
    %c0_223 = arith.constant 0 : index
    %c0_224 = arith.constant 0 : index
    %548 = vector.load %arg7[%c1_221, %c1_222, %c0_223, %c0_224] : memref<2x6x8x128xf32, #tpu.memory_space<vmem>>, vector<1x1x8x128xf32>
    %549 = vector.shape_cast %548 : vector<1x1x8x128xf32> to vector<8x128xf32>
    %550 = arith.mulf %489, %547 : vector<8x128xf32>
    %551 = arith.mulf %490, %549 : vector<8x128xf32>
    %552 = arith.addf %550, %551 : vector<8x128xf32>
    %553 = arith.addf %552, %503 : vector<8x128xf32>
    %554 = arith.mulf %492, %547 : vector<8x128xf32>
    %555 = arith.mulf %493, %549 : vector<8x128xf32>
    %556 = arith.addf %554, %555 : vector<8x128xf32>
    %557 = arith.addf %556, %504 : vector<8x128xf32>
    %558 = arith.mulf %495, %547 : vector<8x128xf32>
    %559 = arith.mulf %496, %549 : vector<8x128xf32>
    %560 = arith.addf %558, %559 : vector<8x128xf32>
    %561 = arith.addf %560, %505 : vector<8x128xf32>
    %562 = arith.mulf %512, %533 : vector<8x128xf32>
    %563 = arith.mulf %513, %539 : vector<8x128xf32>
    %564 = arith.addf %562, %563 : vector<8x128xf32>
    %565 = arith.mulf %514, %545 : vector<8x128xf32>
    %566 = arith.addf %564, %565 : vector<8x128xf32>
    %567 = arith.mulf %500, %533 : vector<8x128xf32>
    %568 = arith.mulf %566, %553 : vector<8x128xf32>
    %569 = arith.subf %567, %568 : vector<8x128xf32>
    %570 = arith.mulf %500, %539 : vector<8x128xf32>
    %571 = arith.mulf %566, %557 : vector<8x128xf32>
    %572 = arith.subf %570, %571 : vector<8x128xf32>
    %573 = arith.mulf %500, %545 : vector<8x128xf32>
    %574 = arith.mulf %566, %561 : vector<8x128xf32>
    %575 = arith.subf %573, %574 : vector<8x128xf32>
    %576 = arith.mulf %569, %569 : vector<8x128xf32>
    %577 = arith.mulf %572, %572 : vector<8x128xf32>
    %578 = arith.addf %576, %577 : vector<8x128xf32>
    %579 = arith.mulf %575, %575 : vector<8x128xf32>
    %580 = arith.addf %578, %579 : vector<8x128xf32>
    %581 = math.sqrt %580 : vector<8x128xf32>
    %c1_225 = arith.constant 1 : index
    %c0_226 = arith.constant 0 : index
    %c0_227 = arith.constant 0 : index
    %c0_228 = arith.constant 0 : index
    %582 = vector.load %arg8[%c1_225, %c0_226, %c0_227, %c0_228] : memref<2x3x8x128xf32, #tpu.memory_space<vmem>>, vector<1x1x8x128xf32>
    %583 = vector.shape_cast %582 : vector<1x1x8x128xf32> to vector<8x128xf32>
    %584 = arith.mulf %581, %583 : vector<8x128xf32>
    %585 = arith.addf %521, %584 : vector<8x128xf32>
    %586 = arith.addf %521, %583 : vector<8x128xf32>
    %c1_229 = arith.constant 1 : index
    %c2_230 = arith.constant 2 : index
    %c0_231 = arith.constant 0 : index
    %c0_232 = arith.constant 0 : index
    %587 = vector.load %arg7[%c1_229, %c2_230, %c0_231, %c0_232] : memref<2x6x8x128xf32, #tpu.memory_space<vmem>>, vector<1x1x8x128xf32>
    %588 = vector.shape_cast %587 : vector<1x1x8x128xf32> to vector<8x128xf32>
    %c1_233 = arith.constant 1 : index
    %c3_234 = arith.constant 3 : index
    %c0_235 = arith.constant 0 : index
    %c0_236 = arith.constant 0 : index
    %589 = vector.load %arg7[%c1_233, %c3_234, %c0_235, %c0_236] : memref<2x6x8x128xf32, #tpu.memory_space<vmem>>, vector<1x1x8x128xf32>
    %590 = vector.shape_cast %589 : vector<1x1x8x128xf32> to vector<8x128xf32>
    %591 = arith.mulf %488, %588 : vector<8x128xf32>
    %592 = arith.mulf %490, %590 : vector<8x128xf32>
    %593 = arith.addf %591, %592 : vector<8x128xf32>
    %594 = arith.addf %593, %506 : vector<8x128xf32>
    %595 = arith.mulf %491, %588 : vector<8x128xf32>
    %596 = arith.mulf %493, %590 : vector<8x128xf32>
    %597 = arith.addf %595, %596 : vector<8x128xf32>
    %598 = arith.addf %597, %507 : vector<8x128xf32>
    %599 = arith.mulf %494, %588 : vector<8x128xf32>
    %600 = arith.mulf %496, %590 : vector<8x128xf32>
    %601 = arith.addf %599, %600 : vector<8x128xf32>
    %602 = arith.addf %601, %508 : vector<8x128xf32>
    %603 = arith.mulf %515, %533 : vector<8x128xf32>
    %604 = arith.mulf %516, %539 : vector<8x128xf32>
    %605 = arith.addf %603, %604 : vector<8x128xf32>
    %606 = arith.mulf %517, %545 : vector<8x128xf32>
    %607 = arith.addf %605, %606 : vector<8x128xf32>
    %608 = arith.mulf %501, %533 : vector<8x128xf32>
    %609 = arith.mulf %607, %594 : vector<8x128xf32>
    %610 = arith.subf %608, %609 : vector<8x128xf32>
    %611 = arith.mulf %501, %539 : vector<8x128xf32>
    %612 = arith.mulf %607, %598 : vector<8x128xf32>
    %613 = arith.subf %611, %612 : vector<8x128xf32>
    %614 = arith.mulf %501, %545 : vector<8x128xf32>
    %615 = arith.mulf %607, %602 : vector<8x128xf32>
    %616 = arith.subf %614, %615 : vector<8x128xf32>
    %617 = arith.mulf %610, %610 : vector<8x128xf32>
    %618 = arith.mulf %613, %613 : vector<8x128xf32>
    %619 = arith.addf %617, %618 : vector<8x128xf32>
    %620 = arith.mulf %616, %616 : vector<8x128xf32>
    %621 = arith.addf %619, %620 : vector<8x128xf32>
    %622 = math.sqrt %621 : vector<8x128xf32>
    %c1_237 = arith.constant 1 : index
    %c1_238 = arith.constant 1 : index
    %c0_239 = arith.constant 0 : index
    %c0_240 = arith.constant 0 : index
    %623 = vector.load %arg8[%c1_237, %c1_238, %c0_239, %c0_240] : memref<2x3x8x128xf32, #tpu.memory_space<vmem>>, vector<1x1x8x128xf32>
    %624 = vector.shape_cast %623 : vector<1x1x8x128xf32> to vector<8x128xf32>
    %625 = arith.mulf %622, %624 : vector<8x128xf32>
    %626 = arith.addf %521, %625 : vector<8x128xf32>
    %627 = arith.addf %521, %624 : vector<8x128xf32>
    %c1_241 = arith.constant 1 : index
    %c4_242 = arith.constant 4 : index
    %c0_243 = arith.constant 0 : index
    %c0_244 = arith.constant 0 : index
    %628 = vector.load %arg7[%c1_241, %c4_242, %c0_243, %c0_244] : memref<2x6x8x128xf32, #tpu.memory_space<vmem>>, vector<1x1x8x128xf32>
    %629 = vector.shape_cast %628 : vector<1x1x8x128xf32> to vector<8x128xf32>
    %c1_245 = arith.constant 1 : index
    %c5_246 = arith.constant 5 : index
    %c0_247 = arith.constant 0 : index
    %c0_248 = arith.constant 0 : index
    %630 = vector.load %arg7[%c1_245, %c5_246, %c0_247, %c0_248] : memref<2x6x8x128xf32, #tpu.memory_space<vmem>>, vector<1x1x8x128xf32>
    %631 = vector.shape_cast %630 : vector<1x1x8x128xf32> to vector<8x128xf32>
    %632 = arith.mulf %488, %629 : vector<8x128xf32>
    %633 = arith.mulf %489, %631 : vector<8x128xf32>
    %634 = arith.addf %632, %633 : vector<8x128xf32>
    %635 = arith.addf %634, %509 : vector<8x128xf32>
    %636 = arith.mulf %491, %629 : vector<8x128xf32>
    %637 = arith.mulf %492, %631 : vector<8x128xf32>
    %638 = arith.addf %636, %637 : vector<8x128xf32>
    %639 = arith.addf %638, %510 : vector<8x128xf32>
    %640 = arith.mulf %494, %629 : vector<8x128xf32>
    %641 = arith.mulf %495, %631 : vector<8x128xf32>
    %642 = arith.addf %640, %641 : vector<8x128xf32>
    %643 = arith.addf %642, %511 : vector<8x128xf32>
    %644 = arith.mulf %518, %533 : vector<8x128xf32>
    %645 = arith.mulf %519, %539 : vector<8x128xf32>
    %646 = arith.addf %644, %645 : vector<8x128xf32>
    %647 = arith.mulf %520, %545 : vector<8x128xf32>
    %648 = arith.addf %646, %647 : vector<8x128xf32>
    %649 = arith.mulf %502, %533 : vector<8x128xf32>
    %650 = arith.mulf %648, %635 : vector<8x128xf32>
    %651 = arith.subf %649, %650 : vector<8x128xf32>
    %652 = arith.mulf %502, %539 : vector<8x128xf32>
    %653 = arith.mulf %648, %639 : vector<8x128xf32>
    %654 = arith.subf %652, %653 : vector<8x128xf32>
    %655 = arith.mulf %502, %545 : vector<8x128xf32>
    %656 = arith.mulf %648, %643 : vector<8x128xf32>
    %657 = arith.subf %655, %656 : vector<8x128xf32>
    %658 = arith.mulf %651, %651 : vector<8x128xf32>
    %659 = arith.mulf %654, %654 : vector<8x128xf32>
    %660 = arith.addf %658, %659 : vector<8x128xf32>
    %661 = arith.mulf %657, %657 : vector<8x128xf32>
    %662 = arith.addf %660, %661 : vector<8x128xf32>
    %663 = math.sqrt %662 : vector<8x128xf32>
    %c1_249 = arith.constant 1 : index
    %c2_250 = arith.constant 2 : index
    %c0_251 = arith.constant 0 : index
    %c0_252 = arith.constant 0 : index
    %664 = vector.load %arg8[%c1_249, %c2_250, %c0_251, %c0_252] : memref<2x3x8x128xf32, #tpu.memory_space<vmem>>, vector<1x1x8x128xf32>
    %665 = vector.shape_cast %664 : vector<1x1x8x128xf32> to vector<8x128xf32>
    %666 = arith.mulf %663, %665 : vector<8x128xf32>
    %667 = arith.addf %521, %666 : vector<8x128xf32>
    %668 = arith.addf %521, %665 : vector<8x128xf32>
    %c1_253 = arith.constant 1 : index
    %c0_254 = arith.constant 0 : index
    %c0_255 = arith.constant 0 : index
    %c0_256 = arith.constant 0 : index
    %c0_257 = arith.constant 0 : index
    %669 = vector.load %arg9[%c1_253, %c0_254, %c0_255, %c0_256, %c0_257] : memref<2x1x3x8x128xf32, #tpu.memory_space<vmem>>, vector<1x1x1x8x128xf32>
    %670 = vector.shape_cast %669 : vector<1x1x1x8x128xf32> to vector<8x128xf32>
    %671 = arith.addf %670, %585 : vector<8x128xf32>
    %c1_258 = arith.constant 1 : index
    %c0_259 = arith.constant 0 : index
    %c0_260 = arith.constant 0 : index
    %c0_261 = arith.constant 0 : index
    %c0_262 = arith.constant 0 : index
    %672 = vector.load %arg9[%c1_258, %c0_259, %c0_260, %c0_261, %c0_262] : memref<2x1x3x8x128xf32, #tpu.memory_space<vmem>>, vector<1x1x1x8x128xf32>
    %673 = vector.shape_cast %672 : vector<1x1x1x8x128xf32> to vector<8x128xf32>
    %674 = vector.shape_cast %671 : vector<8x128xf32> to vector<1x1x1x8x128xf32>
    tpu.vector_store %arg9[%c1_258, %c0_259, %c0_260, %c0_261, %c0_262], %674 {strides = array<i32>} : memref<2x1x3x8x128xf32, #tpu.memory_space<vmem>>, vector<1x1x1x8x128xf32>,
    %c1_263 = arith.constant 1 : index
    %c0_264 = arith.constant 0 : index
    %c0_265 = arith.constant 0 : index
    %c0_266 = arith.constant 0 : index
    %c0_267 = arith.constant 0 : index
    %675 = vector.load %arg10[%c1_263, %c0_264, %c0_265, %c0_266, %c0_267] : memref<2x1x3x8x128xf32, #tpu.memory_space<vmem>>, vector<1x1x1x8x128xf32>
    %676 = vector.shape_cast %675 : vector<1x1x1x8x128xf32> to vector<8x128xf32>
    %677 = arith.addf %676, %586 : vector<8x128xf32>
    %c1_268 = arith.constant 1 : index
    %c0_269 = arith.constant 0 : index
    %c0_270 = arith.constant 0 : index
    %c0_271 = arith.constant 0 : index
    %c0_272 = arith.constant 0 : index
    %678 = vector.load %arg10[%c1_268, %c0_269, %c0_270, %c0_271, %c0_272] : memref<2x1x3x8x128xf32, #tpu.memory_space<vmem>>, vector<1x1x1x8x128xf32>
    %679 = vector.shape_cast %678 : vector<1x1x1x8x128xf32> to vector<8x128xf32>
    %680 = vector.shape_cast %677 : vector<8x128xf32> to vector<1x1x1x8x128xf32>
    tpu.vector_store %arg10[%c1_268, %c0_269, %c0_270, %c0_271, %c0_272], %680 {strides = array<i32>} : memref<2x1x3x8x128xf32, #tpu.memory_space<vmem>>, vector<1x1x1x8x128xf32>,
    %c1_273 = arith.constant 1 : index
    %c0_274 = arith.constant 0 : index
    %c1_275 = arith.constant 1 : index
    %c0_276 = arith.constant 0 : index
    %c0_277 = arith.constant 0 : index
    %681 = vector.load %arg9[%c1_273, %c0_274, %c1_275, %c0_276, %c0_277] : memref<2x1x3x8x128xf32, #tpu.memory_space<vmem>>, vector<1x1x1x8x128xf32>
    %682 = vector.shape_cast %681 : vector<1x1x1x8x128xf32> to vector<8x128xf32>
    %683 = arith.addf %682, %626 : vector<8x128xf32>
    %c1_278 = arith.constant 1 : index
    %c0_279 = arith.constant 0 : index
    %c1_280 = arith.constant 1 : index
    %c0_281 = arith.constant 0 : index
    %c0_282 = arith.constant 0 : index
    %684 = vector.load %arg9[%c1_278, %c0_279, %c1_280, %c0_281, %c0_282] : memref<2x1x3x8x128xf32, #tpu.memory_space<vmem>>, vector<1x1x1x8x128xf32>
    %685 = vector.shape_cast %684 : vector<1x1x1x8x128xf32> to vector<8x128xf32>
    %686 = vector.shape_cast %683 : vector<8x128xf32> to vector<1x1x1x8x128xf32>
    tpu.vector_store %arg9[%c1_278, %c0_279, %c1_280, %c0_281, %c0_282], %686 {strides = array<i32>} : memref<2x1x3x8x128xf32, #tpu.memory_space<vmem>>, vector<1x1x1x8x128xf32>,
    %c1_283 = arith.constant 1 : index
    %c0_284 = arith.constant 0 : index
    %c1_285 = arith.constant 1 : index
    %c0_286 = arith.constant 0 : index
    %c0_287 = arith.constant 0 : index
    %687 = vector.load %arg10[%c1_283, %c0_284, %c1_285, %c0_286, %c0_287] : memref<2x1x3x8x128xf32, #tpu.memory_space<vmem>>, vector<1x1x1x8x128xf32>
    %688 = vector.shape_cast %687 : vector<1x1x1x8x128xf32> to vector<8x128xf32>
    %689 = arith.addf %688, %627 : vector<8x128xf32>
    %c1_288 = arith.constant 1 : index
    %c0_289 = arith.constant 0 : index
    %c1_290 = arith.constant 1 : index
    %c0_291 = arith.constant 0 : index
    %c0_292 = arith.constant 0 : index
    %690 = vector.load %arg10[%c1_288, %c0_289, %c1_290, %c0_291, %c0_292] : memref<2x1x3x8x128xf32, #tpu.memory_space<vmem>>, vector<1x1x1x8x128xf32>
    %691 = vector.shape_cast %690 : vector<1x1x1x8x128xf32> to vector<8x128xf32>
    %692 = vector.shape_cast %689 : vector<8x128xf32> to vector<1x1x1x8x128xf32>
    tpu.vector_store %arg10[%c1_288, %c0_289, %c1_290, %c0_291, %c0_292], %692 {strides = array<i32>} : memref<2x1x3x8x128xf32, #tpu.memory_space<vmem>>, vector<1x1x1x8x128xf32>,
    %c1_293 = arith.constant 1 : index
    %c0_294 = arith.constant 0 : index
    %c2_295 = arith.constant 2 : index
    %c0_296 = arith.constant 0 : index
    %c0_297 = arith.constant 0 : index
    %693 = vector.load %arg9[%c1_293, %c0_294, %c2_295, %c0_296, %c0_297] : memref<2x1x3x8x128xf32, #tpu.memory_space<vmem>>, vector<1x1x1x8x128xf32>
    %694 = vector.shape_cast %693 : vector<1x1x1x8x128xf32> to vector<8x128xf32>
    %695 = arith.addf %694, %667 : vector<8x128xf32>
    %c1_298 = arith.constant 1 : index
    %c0_299 = arith.constant 0 : index
    %c2_300 = arith.constant 2 : index
    %c0_301 = arith.constant 0 : index
    %c0_302 = arith.constant 0 : index
    %696 = vector.load %arg9[%c1_298, %c0_299, %c2_300, %c0_301, %c0_302] : memref<2x1x3x8x128xf32, #tpu.memory_space<vmem>>, vector<1x1x1x8x128xf32>
    %697 = vector.shape_cast %696 : vector<1x1x1x8x128xf32> to vector<8x128xf32>
    %698 = vector.shape_cast %695 : vector<8x128xf32> to vector<1x1x1x8x128xf32>
    tpu.vector_store %arg9[%c1_298, %c0_299, %c2_300, %c0_301, %c0_302], %698 {strides = array<i32>} : memref<2x1x3x8x128xf32, #tpu.memory_space<vmem>>, vector<1x1x1x8x128xf32>,
    %c1_303 = arith.constant 1 : index
    %c0_304 = arith.constant 0 : index
    %c2_305 = arith.constant 2 : index
    %c0_306 = arith.constant 0 : index
    %c0_307 = arith.constant 0 : index
    %699 = vector.load %arg10[%c1_303, %c0_304, %c2_305, %c0_306, %c0_307] : memref<2x1x3x8x128xf32, #tpu.memory_space<vmem>>, vector<1x1x1x8x128xf32>
    %700 = vector.shape_cast %699 : vector<1x1x1x8x128xf32> to vector<8x128xf32>
    %701 = arith.addf %700, %668 : vector<8x128xf32>
    %c1_308 = arith.constant 1 : index
    %c0_309 = arith.constant 0 : index
    %c2_310 = arith.constant 2 : index
    %c0_311 = arith.constant 0 : index
    %c0_312 = arith.constant 0 : index
    %702 = vector.load %arg10[%c1_308, %c0_309, %c2_310, %c0_311, %c0_312] : memref<2x1x3x8x128xf32, #tpu.memory_space<vmem>>, vector<1x1x1x8x128xf32>
    %703 = vector.shape_cast %702 : vector<1x1x1x8x128xf32> to vector<8x128xf32>
    %704 = vector.shape_cast %701 : vector<8x128xf32> to vector<1x1x1x8x128xf32>
    tpu.vector_store %arg10[%c1_308, %c0_309, %c2_310, %c0_311, %c0_312], %704 {strides = array<i32>} : memref<2x1x3x8x128xf32, #tpu.memory_space<vmem>>, vector<1x1x1x8x128xf32>,
    return
  }
  func.func @transform_0(%arg0: i32, %arg1: i32, %arg2: i32) -> i32 {
    %c0_i32 = arith.constant 0 : i32
    %c0_i32_0 = arith.constant 0 : i32
    return %c0_i32 : i32
  }
  func.func @transform_1(%arg0: i32, %arg1: i32, %arg2: i32) -> i32 {
    %c0_i32 = arith.constant 0 : i32
    %c0_i32_0 = arith.constant 0 : i32
    return %c0_i32 : i32
  }
  func.func @transform_2(%arg0: i32, %arg1: i32, %arg2: i32) -> i32 {
    %c0_i32 = arith.constant 0 : i32
    %c0_i32_0 = arith.constant 0 : i32
    return %c0_i32 : i32
  }
  func.func @transform_3(%arg0: i32, %arg1: i32, %arg2: i32) -> (i32, i32, i32, i32) {
    %c1_i32 = arith.constant 1 : i32
    %0 = arith.muli %arg1, %c1_i32 : i32
    %1 = arith.addi %0, %arg2 : i32
    %c0_i32 = arith.constant 0 : i32
    %c0_i32_0 = arith.constant 0 : i32
    %c0_i32_1 = arith.constant 0 : i32
    return %arg0, %c0_i32, %1, %c0_i32_0 : i32, i32, i32, i32
  }
  func.func @transform_4(%arg0: i32, %arg1: i32, %arg2: i32) -> (i32, i32, i32, i32) {
    %c1_i32 = arith.constant 1 : i32
    %0 = arith.muli %arg1, %c1_i32 : i32
    %1 = arith.addi %0, %arg2 : i32
    %c0_i32 = arith.constant 0 : i32
    %c0_i32_0 = arith.constant 0 : i32
    %c0_i32_1 = arith.constant 0 : i32
    return %arg0, %c0_i32, %1, %c0_i32_0 : i32, i32, i32, i32
  }
  func.func @transform_5(%arg0: i32, %arg1: i32, %arg2: i32) -> (i32, i32, i32, i32) {
    %c1_i32 = arith.constant 1 : i32
    %0 = arith.muli %arg1, %c1_i32 : i32
    %1 = arith.addi %0, %arg2 : i32
    %c0_i32 = arith.constant 0 : i32
    %c0_i32_0 = arith.constant 0 : i32
    %c0_i32_1 = arith.constant 0 : i32
    return %arg0, %c0_i32, %1, %c0_i32_0 : i32, i32, i32, i32
  }
  func.func @transform_6(%arg0: i32, %arg1: i32, %arg2: i32) -> (i32, i32, i32, i32, i32) {
    %c0_i32 = arith.constant 0 : i32
    %c0_i32_0 = arith.constant 0 : i32
    %c0_i32_1 = arith.constant 0 : i32
    %c0_i32_2 = arith.constant 0 : i32
    return %arg0, %arg1, %c0_i32, %c0_i32_0, %c0_i32_1 : i32, i32, i32, i32, i32
  }
  func.func @transform_7(%arg0: i32, %arg1: i32, %arg2: i32) -> (i32, i32, i32, i32, i32) {
    %c0_i32 = arith.constant 0 : i32
    %c0_i32_0 = arith.constant 0 : i32
    %c0_i32_1 = arith.constant 0 : i32
    %c0_i32_2 = arith.constant 0 : i32
    return %arg0, %arg1, %c0_i32, %c0_i32_0, %c0_i32_1 : i32, i32, i32, i32, i32
  }
}

</mosaic_0001>

<bundles_post_ra>
// kernel: tpu_custom_call.1
= control target key start
LH: loop header
LB: loop body
LE: loop exit
PB: predicated region body
PF: predicated region fallthrough
CT: control target
= control target key end

     0   :  { %s1669_s0 = inlined_call_operand.hbm [shape: f32[18], index: 0, kind: input, shape index: {}]   ;;  %s1670_s1 = inlined_call_operand.vmem [shape: f32[6], index: 1, kind: input, shape index: {}]   ;;  %s1671_s2 = inlined_call_operand.vmem [shape: f32[6], index: 2, kind: input, shape index: {}]   ;;  %s1672_s3 = inlined_call_operand.hbm [shape: f32[2,3,8,128], index: 3, kind: input, shape index: {}]   ;;  %s1673_s4 = inlined_call_operand.hbm [shape: f32[2,6,8,128], index: 4, kind: input, shape index: {}]   ;;  %s1674_s5 = inlined_call_operand.hbm [shape: f32[2,3,8,128], index: 5, kind: input, shape index: {}]   ;;  %s1675_s6 = inlined_call_operand.hbm [shape: f32[2,1,3,8,128], index: 6, kind: output, shape index: {0}]   ;;  %s1676_s7 = inlined_call_operand.hbm [shape: f32[2,1,3,8,128], index: 7, kind: output, shape index: {1}]  }
   0x1   :  { %1690 = sst [smem:[#allocation29_spill]] %s1675_s6 }
   0x2   :  { %1691 = sst [smem:[#allocation30_spill]] %s1676_s7 }
   0x3   :  { %13 = vsyncpa [#allocation5], 0 }
   0x4   :  { %14 = vsyncpa [#allocation6], 0 }
   0x5   :  { %15 = vsyncpa [#allocation9], 0 }
   0x6   :  { %16 = vsyncpa [#allocation3], 0 }
   0x7   :  { %17 = vsyncpa [#allocation12], 0 }
   0x8   :  { %18 = vsyncpa [#allocation4], 0 }
   0x9   :  { %19 = vsyncpa [#allocation16], 0  ;;  %s981_s24 = smov [#allocation11]   ;;  %s34_s28 = sshll.u32 %s1670_s1, 4  ;;  %s35_s28 = int_to_ptr.vmem [resolvable:$true] %s34_s28 }
   0xa   :  { %s71_s25 = sshll.u32 %s981_s24, 4  ;;  %s72_s25 = int_to_ptr.vmem [resolvable:$true] %s71_s25 }
   0xb   :  { %s843_s29 = scalar_lea.vmem %s72_s25, 1536  ;;  %p848_p1 = scmp.lt.s32.totalorder %s72_s25, %s72_s25 }
   0xc   :  { %p844_p0 = scmp.ne.s32.totalorder %s72_s25, %s843_s29  ;;  %p849_p2 = scmp.lt.s32.totalorder %s843_s29, %s843_s29 }
   0xe   :  { %p850_p3 = por %p849_p2, %p848_p1 }
  0x10   :  { %p851_p4 = pnand %p850_p3, %p844_p0 }
  0x12   :  { %854 = shalt.err (!%p851_p4)
}
  0x13   :  { %s1677_s30 = smov 128   ;;  %s1679_s8 = smov 8  }
  0x14   :  { %77 = dma.hbm_to_vmem [thread:$0]  %s1673_s4, 1536, %s72_s25, [#allocation12], %s1677_s30, %s1677_s30, %s1679_s8  }
  0x15   :  { %s984_s11 = smov [#allocation2]   ;;  %s44_s15 = sshll.u32 %s1671_s2, 4  ;;  %s45_s15 = int_to_ptr.vmem [resolvable:$true] %s44_s15 }
  0x16   :  { %27 = dma.hbm_to_smem %s1669_s0, 16, %s984_s11, [#allocation5]  }
  0x17   :  { %s863_s16 = scalar_lea.vmem %s35_s28, 16  ;;  %p868_p6 = scmp.lt.s32.totalorder %s35_s28, %s35_s28 }
  0x18   :  { %p864_p5 = scmp.ne.s32.totalorder %s35_s28, %s863_s16  ;;  %p869_p7 = scmp.lt.s32.totalorder %s863_s16, %s863_s16 }
  0x1a   :  { %p870_p8 = por %p869_p7, %p868_p6 }
  0x1c   :  { %p871_p9 = pnand %p870_p8, %p864_p5 }
  0x1e   :  { %874 = shalt.err (!%p871_p9)
}
  0x1f   :  { %s985_s17 = smov [#allocation7]   ;;  %s875_s4 = scalar_lea.vmem %s45_s15, 16 }
  0x20   :  { %37 = dma.vmem_to_smem %s35_s28, 16, %s985_s17, [#allocation6]  }
  0x21   :  { %p876_p10 = scmp.ne.s32.totalorder %s45_s15, %s875_s4  ;;  %p880_p11 = scmp.lt.s32.totalorder %s45_s15, %s45_s15 }
  0x22   :  { %p881_p12 = scmp.lt.s32.totalorder %s875_s4, %s875_s4 }
  0x24   :  { %p882_p13 = por %p881_p12, %p880_p11 }
  0x26   :  { %p883_p0 = pnand %p882_p13, %p876_p10 }
  0x28   :  { %886 = shalt.err (!%p883_p0)
}
  0x29   :  { %s986_s0 = smov [#allocation8]   ;;  %s987_s2 = smov [#allocation10]  }
  0x2a   :  { %47 = dma.vmem_to_smem %s45_s15, 16, %s986_s0, [#allocation9]  }
  0x2b   :  { %s56_s18 = sshll.u32 %s987_s2, 4  ;;  %s988_s19 = smov [#allocation13]   ;;  %s57_s18 = int_to_ptr.vmem [resolvable:$true] %s56_s18 }
  0x2c   :  { %s86_s20 = sshll.u32 %s988_s19, 4  ;;  %s895_s21 = scalar_lea.vmem %s57_s18, 768  ;;  %s87_s20 = int_to_ptr.vmem [resolvable:$true] %s86_s20 }
  0x2d   :  { %p896_p1 = scmp.ne.s32.totalorder %s57_s18, %s895_s21  ;;  %p900_p2 = scmp.lt.s32.totalorder %s57_s18, %s57_s18 }
  0x2e   :  { %p901_p3 = scmp.lt.s32.totalorder %s895_s21, %s895_s21 }
  0x30   :  { %p902_p4 = por %p901_p3, %p900_p2 }
  0x32   :  { %p903_p5 = pnand %p902_p4, %p896_p1 }
  0x34   :  { %906 = shalt.err (!%p903_p5)
}
  0x35   :  { %62 = dma.hbm_to_vmem [thread:$0]  %s1672_s3, 768, %s57_s18, [#allocation3], %s1677_s30, %s1677_s30, %s1679_s8  }
  0x36   :  { %s915_s24 = scalar_lea.vmem %s87_s20, 768  ;;  %p920_p7 = scmp.lt.s32.totalorder %s87_s20, %s87_s20 }
  0x37   :  { %p916_p6 = scmp.ne.s32.totalorder %s87_s20, %s915_s24  ;;  %p921_p8 = scmp.lt.s32.totalorder %s915_s24, %s915_s24 }
  0x39   :  { %p922_p9 = por %p921_p8, %p920_p7 }
  0x3b   :  { %p923_p10 = pnand %p922_p9, %p916_p6 }
  0x3d   :  { %926 = shalt.err (!%p923_p10)
}
  0x3e   :  { %92 = dma.hbm_to_vmem [thread:$0]  %s1674_s5, 768, %s87_s20, [#allocation12], %s1677_s30, %s1677_s30, %s1679_s8  }
  0x3f   :  { %967 = dma.done.wait [#allocation5], 16  }
  0x40   :  { %968 = vsyncadd [#allocation5], 4294967280 }
  0x41   :  { %969 = dma.done.wait [#allocation6], 16  }
  0x42   :  { %970 = vsyncadd [#allocation6], 4294967280 }
  0x43   :  { %971 = dma.done.wait [#allocation9], 16  }
  0x44   :  { %972 = vsyncadd [#allocation9], 4294967280 }
  0x45   :  { %973 = dma.done.wait [#allocation3], 768  }
  0x46   :  { %974 = vsyncadd [#allocation3], 4294966528 }
  0x47   :  { %975 = dma.done.wait [#allocation12], 2304  }
  0x48   :  { %976 = vsyncadd [#allocation12], 4294964992 }
  0x49   :  { %111 = sfence }
  0x4a   :  { %s1058_s3 = sld [smem:[#allocation2]]  ;;  %v1060_v0 = vld [vmem:[#allocation13] sm:$0xff]  ;;  %v1064_v1 = vld [vmem:[#allocation13 + $0x8] sm:$0xff]  ;;  %v1068_v2 = vld [vmem:[#allocation13 + $0x10] sm:$0xff] }
  0x4b   :  { %s1062_s27 = sld [smem:[#allocation2 + $0x1]]  ;;  %418 = vst [vmem:[#allocation15] sm:$0xff] %v1060_v0  ;;  %426 = vst [vmem:[#allocation15 + $0x8] sm:$0xff] %v1064_v1  ;;  %v1076_v3 = vld [vmem:[#allocation13 + $0x18] sm:$0xff]  ;;  %v671_v4 = vld [vmem:[#allocation13 + $0x20] sm:$0xff] }
  0x4c   :  { %s1066_s5 = sld [smem:[#allocation2 + $0x2]]  ;;  %434 = vst [vmem:[#allocation15 + $0x10] sm:$0xff] %v1068_v2  ;;  %v718_v5 = vld [vmem:[#allocation13 + $0x28] sm:$0xff]  ;;  %729 = vst [vmem:[#allocation15 + $0x18] sm:$0xff] %v1076_v3  ;;  %v251_v6 = vld [vmem:[#allocation10] sm:$0xff] }
  0x4d   :  { %s1070_s28 = sld [smem:[#allocation2 + $0x3]]  ;;  %737 = vst [vmem:[#allocation15 + $0x20] sm:$0xff] %v671_v4  ;;  %745 = vst [vmem:[#allocation15 + $0x28] sm:$0xff] %v718_v5  ;;  %v253_v7 = vld [vmem:[#allocation10 + $0x8] sm:$0xff]  ;;  %v255_v11 = vld [vmem:[#allocation10 + $0x10] sm:$0xff] }
  0x4e   :  { %s1073_s29 = sld [smem:[#allocation2 + $0x4]]  ;;  %v320_v21 = vld [vmem:[#allocation11 + $0x10] sm:$0xff]  ;;  %v1162_v23 = vld [vmem:[#allocation11 + $0x20] sm:$0xff]  ;;  %v276_v31 = vld [vmem:[#allocation11 + $0x8] sm:$0xff] }
  0x4f   :  { %s1078_s9 = sld [smem:[#allocation2 + $0x5]]  ;;  %v274_v28 = vld [vmem:[#allocation11] sm:$0xff]  ;;  %v322_v36 = vld [vmem:[#allocation11 + $0x18] sm:$0xff]  ;;  %v369_v59 = vld [vmem:[#allocation11 + $0x28] sm:$0xff] }
  0x50   :  { %s1081_s10 = sld [smem:[#allocation2 + $0x6]]  ;;  %v242_v10 = vstv %s1058_s3 }
  0x51   :  { %s1083_s11 = sld [smem:[#allocation2 + $0x7]]  ;;  %v245_v13 = vstv %s1062_s27 }
  0x52   :  { %s1086_s1 = sld [smem:[#allocation7]]  ;;  %v248_v17 = vstv %s1066_s5 }
  0x53   :  { %s1088_s12 = sld [smem:[#allocation7 + $0x1]]  ;;  %v243_v15 = vstv %s1070_s28 }
  0x54   :  { %s1090_s13 = sld [smem:[#allocation7 + $0x2]]  ;;  %v246_v20 = vstv %s1073_s29 }
  0x55   :  { %s1092_s14 = sld [smem:[#allocation8]]  ;;  %v249_v22 = vstv %s1078_s9 }
  0x56   :  { %s1094_s15 = sld [smem:[#allocation8 + $0x1]]  ;;  %v244_v19 = vstv %s1081_s10 }
  0x57   :  { %s1096_s16 = sld [smem:[#allocation8 + $0x2]]  ;;  %v247_v32 = vstv %s1083_s11 }
  0x58   :  { %s1098_s17 = sld [smem:[#allocation2 + $0x8]]  ;;  %s179_s4 = smul.f32 %s1086_s1, %s1058_s3 }
  0x59   :  { %s180_s0 = smul.f32 %s1088_s12, %s1070_s28  ;;  %s1104_s2 = sld [smem:[#allocation2 + $0x9]] }
  0x5a   :  { %s182_s18 = smul.f32 %s1090_s13, %s1081_s10  ;;  %s1108_s19 = sld [smem:[#allocation2 + $0xa]] }
  0x5b   :  { %s1112_s20 = smul.f32 %s1092_s14, %s1058_s3  ;;  %s181_s21 = sadd.f32 %s180_s0, %s179_s4 }
  0x5c   :  { %s1116_s22 = smul.f32 %s1094_s15, %s1062_s27  ;;  %s1118_s23 = sld [smem:[#allocation2 + $0xb]] }
  0x5d   :  { %s1122_s24 = smul.f32 %s1096_s16, %s1066_s5  ;;  %s1124_s25 = sadd.f32 %s182_s18, %s181_s21  ;;  %v218_v8 = vstv %s1112_s20 }
  0x5e   :  { %s1129_s26 = smul.f32 %s1070_s28, %s1092_s14  ;;  %s1133_s4 = sadd.f32 %s1116_s22, %s1112_s20  ;;  %v1136_v9 = vstv %s1116_s22  ;;  %v256_v12 = vmul.f32 %v251_v6, %v218_v8  ;;  %v250_v33 = vstv %s1098_s17  ;;  %v323_v37 = vmul.f32 %v320_v21, %v218_v8 }
  0x5f   :  { %1692 = sst [smem:[#allocation24_spill]] %s1104_s2  ;;  %s1142_s0 = smul.f32 %s1094_s15, %s1073_s29  ;;  %v220_v14 = vstv %s1122_s24  ;;  %v257_v16 = vmul.f32 %v253_v7, %v1136_v9  ;;  %v1196_v38 = vmul.f32 %v1162_v23, %v218_v8  ;;  %v277_v42 = vmul.f32 %v274_v28, %v1136_v9 }
  0x60   :  { %1693 = sst [smem:[#allocation25_spill]] %s1108_s19  ;;  %s1152_s21 = smul.f32 %s1096_s16, %s1078_s9  ;;  %v1157_v18 = vstv %s1129_s26  ;;  %v259_v26 = vmul.f32 %v255_v11, %v220_v14  ;;  %v278_v46 = vmul.f32 %v276_v31, %v220_v14  ;;  %v324_v50 = vmul.f32 %v322_v36, %v220_v14 }
  0x61   :  { %1695 = sst [smem:[#allocation27_spill]] %s1133_s4  ;;  %s1166_s8 = smul.f32 %s1081_s10, %s1092_s14  ;;  %v1173_v24 = vstv %s1142_s0  ;;  %v258_v25 = vadd.f32 %v257_v16, %v256_v12  ;;  %v262_v27 = vmul.f32 %v251_v6, %v1157_v18  ;;  %v1230_v56 = vstv %s1124_s25 }
  0x62   :  { %1694 = sst [smem:[#allocation26_spill]] %s1118_s23  ;;  %s1178_s6 = smul.f32 %s1094_s15, %s1083_s11  ;;  %v223_v29 = vstv %s1152_s21  ;;  %v263_v30 = vmul.f32 %v253_v7, %v1173_v24  ;;  %v281_v48 = vmul.f32 %v274_v28, %v1173_v24  ;;  %v327_v57 = vmul.f32 %v320_v21, %v1157_v18 }
  0x63   :  { %s168_s30 = sadd.f32 %s1133_s4, %s1122_s24  ;;  %s1188_s14 = smul.f32 %s1096_s16, %s1098_s17  ;;  %v1193_v34 = vstv %s1166_s8  ;;  %v265_v35 = vmul.f32 %v255_v11, %v223_v29  ;;  %v260_v44 = vadd.f32 %v259_v26, %v258_v25  ;;  %v282_v49 = vmul.f32 %v276_v31, %v223_v29 }
  0x64   :  { %s1170_s18 = sadd.f32 %s1142_s0, %s1129_s26  ;;  %v1203_v39 = vstv %s1178_s6  ;;  %v264_v40 = vadd.f32 %v263_v30, %v262_v27  ;;  %v268_v41 = vmul.f32 %v251_v6, %v1193_v34  ;;  %v328_v58 = vmul.f32 %v322_v36, %v223_v29  ;;  %s189_s28 = smul.f32 %s1066_s5, %s1086_s1 }
  0x65   :  { %s169_s15 = smul.f32 0.5, %s168_s30  ;;  %s1200_s7 = sadd.f32 %s1178_s6, %s1166_s8  ;;  %v226_v43 = vstv %s1188_s14  ;;  %v269_v45 = vmul.f32 %v253_v7, %v1203_v39  ;;  %v285_v53 = vmul.f32 %v274_v28, %v1203_v39  ;;  %v331_v62 = vmul.f32 %v320_v21, %v1193_v34 }
  0x66   :  { %1696 = sst [smem:[#allocation28_spill]] %s1170_s18  ;;  %v266_v47 = vadd.f32 %v265_v35, %v264_v40  ;;  %v271_v52 = vmul.f32 %v255_v11, %v226_v43  ;;  %v286_v54 = vmul.f32 %v276_v31, %v226_v43  ;;  %v332_v63 = vmul.f32 %v322_v36, %v226_v43 }
  0x67   :  { %s172_s23 = sadd.f32 %s1170_s18, %s1152_s21  ;;  %v270_v51 = vadd.f32 %v269_v45, %v268_v41  ;;  %v279_v5 = vadd.f32 %v278_v46, %v277_v42  ;;  %v283_v6 = vadd.f32 %v282_v49, %v281_v48  ;;  %v1244_v7 = vadd.f32 %v324_v50, %v323_v37 }
  0x68   :  { %s200_s19 = sadd.f32 %s1188_s14, %s1178_s6  ;;  %v287_v11 = vadd.f32 %v286_v54, %v285_v53  ;;  %v371_v14 = vmul.f32 %v369_v59, %v1136_v9  ;;  %v1260_v21 = vadd.f32 %v328_v58, %v327_v57  ;;  %v333_v27 = vadd.f32 %v332_v63, %v331_v62 }
  0x69   :  { %s173_s16 = smul.f32 0.5, %s172_s23  ;;  %s170_s30 = ssub.f32 %s1086_s1, %s169_s15  ;;  %v272_v8 = vadd.f32 %v271_v52, %v270_v51 }
  0x6a   :  { %s1697_s2 = sadd.f32 %s1122_s24, %s1116_s22  ;;  %s1227_s22 = smul.f32 0.5, %s200_s19  ;;  %v372_v42 = vadd.f32 %v371_v14, %v1196_v38 }
  0x6b   :  { %s174_s6 = ssub.f32 %s1088_s12, %s173_s16  ;;  %v227_v55 = vstv %s170_s30  ;;  %s184_s15 = smul.f32 %s1062_s27, %s1086_s1 }
  0x6c   :  { %s1215_s18 = smul.f32 0.5, %s1697_s2  ;;  %s1698_s23 = sadd.f32 %s1152_s21, %s1142_s0  ;;  %v1235_v61 = vadd.f32 %v260_v44, %v227_v55 }
  0x6d   :  { %s176_s2 = sadd.f32 %s1200_s7, %s1188_s14  ;;  %v228_v60 = vstv %s174_s6  ;;  %s185_s16 = smul.f32 %s1088_s12, %s1073_s29 }
  0x6e   :  { %s1222_s4 = smul.f32 0.5, %s1698_s23  ;;  %s196_s0 = ssub.f32 %s1086_s1, %s1215_s18  ;;  %v1242_v4 = vadd.f32 %v266_v47, %v228_v60  ;;  %v289_v12 = vmul.f32 %v1235_v61, %v242_v10  ;;  %v335_v25 = vmul.f32 %v1235_v61, %v245_v13  ;;  %v374_v10 = vmul.f32 %v1162_v23, %v1157_v18 }
  0x6f   :  { %s177_s19 = smul.f32 0.5, %s176_s2  ;;  %s202_s18 = ssub.f32 %s1090_s13, %s1227_s22  ;;  %v375_v13 = vmul.f32 %v369_v59, %v1173_v24  ;;  %v378_v18 = vmul.f32 %v1162_v23, %v1193_v34  ;;  %v379_v23 = vmul.f32 %v369_v59, %v1203_v39  ;;  %v294_v41 = vmul.f32 %v1235_v61, %v1230_v56 }
  0x70   :  { %s199_s25 = ssub.f32 %s1088_s12, %s1222_s4  ;;  %v290_v16 = vmul.f32 %v1242_v4, %v243_v15  ;;  %s187_s30 = smul.f32 %s1090_s13, %s1083_s11  ;;  %v233_v26 = vstv %s196_s0  ;;  %v336_v15 = vmul.f32 %v1242_v4, %v246_v20  ;;  %v382_v20 = vmul.f32 %v1235_v61, %v248_v17 }
  0x71   :  { %s178_s4 = ssub.f32 %s1090_s13, %s177_s19  ;;  %v235_v29 = vstv %s202_s18  ;;  %s190_s6 = smul.f32 %s1088_s12, %s1078_s9  ;;  %v383_v35 = vmul.f32 %v1242_v4, %v249_v22  ;;  %v280_v24 = vadd.f32 %v279_v5, %v233_v26  ;;  %v297_v39 = vmul.f32 %v1242_v4, %v1230_v56 }
  0x72   :  { %v234_v9 = vstv %s199_s25  ;;  %s186_s3 = sadd.f32 %s185_s16, %s184_s15  ;;  %v291_v31 = vadd.f32 %v290_v16, %v289_v12  ;;  %s192_s2 = smul.f32 %s1090_s13, %s1098_s17  ;;  %v337_v37 = vadd.f32 %v336_v15, %v335_v25  ;;  %v288_v34 = vadd.f32 %v287_v11, %v235_v29 }
  0x73   :  { %v229_v28 = vstv %s178_s4  ;;  %s203_s27 = sadd.f32 %s1122_s24, %s1112_s20  ;;  %v284_v36 = vadd.f32 %v283_v6, %v234_v9  ;;  %v380_v48 = vadd.f32 %v379_v23, %v378_v18  ;;  %s216_s9 = smul.f32 0.5, %s1200_s7 }
  0x74   :  { %v1279_v30 = vadd.f32 %v272_v8, %v229_v28  ;;  %s1699_s29 = sld [smem:[#allocation27_spill]] }
  0x75   :  { %s188_s23 = sadd.f32 %s187_s30, %s186_s3  ;;  %s204_s20 = smul.f32 0.5, %s203_s27 }
  0x76   :  { %s206_s24 = sadd.f32 %s1152_s21, %s1129_s26  ;;  %v292_v40 = vmul.f32 %v1279_v30, %v244_v19  ;;  %v338_v22 = vmul.f32 %v1279_v30, %v247_v32  ;;  %v384_v19 = vadd.f32 %v383_v35, %v382_v20  ;;  %v300_v44 = vmul.f32 %v1279_v30, %v1230_v56 }
  0x77   :  { %s209_s22 = sadd.f32 %s1188_s14, %s1166_s8  ;;  %v231_v17 = vstv %s188_s23  ;;  %v376_v32 = vadd.f32 %v375_v13, %v374_v10  ;;  %v385_v45 = vmul.f32 %v1279_v30, %v250_v33 }
  0x78   :  { %s1700_s26 = sld [smem:[#allocation28_spill]]  ;;  %s207_s15 = smul.f32 0.5, %s206_s24  ;;  %v293_v43 = vadd.f32 %v292_v40, %v291_v31  ;;  %v339_v38 = vadd.f32 %v338_v22, %v337_v37  ;;  %v340_v47 = vmul.f32 %v1235_v61, %v231_v17  ;;  %v343_v53 = vmul.f32 %v1242_v4, %v231_v17 }
  0x79   :  { %s205_s21 = ssub.f32 %s1086_s1, %s204_s20  ;;  %s210_s8 = smul.f32 0.5, %s209_s22  ;;  %v346_v54 = vmul.f32 %v1279_v30, %v231_v17  ;;  %v386_v55 = vadd.f32 %v385_v45, %v384_v19 }
  0x7a   :  { %s212_s0 = smul.f32 0.5, %s1699_s29  ;;  %s191_s10 = sadd.f32 %s190_s6, %s189_s28  ;;  %v295_v49 = vmul.f32 %v293_v43, %v280_v24  ;;  %v298_v50 = vmul.f32 %v293_v43, %v284_v36  ;;  %v301_v51 = vmul.f32 %v293_v43, %v288_v34 }
  0x7b   :  { %s208_s11 = ssub.f32 %s1088_s12, %s207_s15  ;;  %v236_v46 = vstv %s205_s21 }
  0x7c   :  { %s211_s5 = ssub.f32 %s1090_s13, %s210_s8  ;;  %v326_v52 = vadd.f32 %v1244_v7, %v236_v46  ;;  %v296_v56 = vsub.f32 %v294_v41, %v295_v49  ;;  %v299_v57 = vsub.f32 %v297_v39, %v298_v50  ;;  %v302_v58 = vsub.f32 %v300_v44, %v301_v51  ;;  %v1383_v44 = vld [vmem:[#allocation10 + $0x18] sm:$0xff]  ;;  %v1406_v51 = vld [vmem:[#allocation11 + $0x40] sm:$0xff] }
  0x7d   :  { %v237_v33 = vstv %s208_s11  ;;  %s193_s19 = sadd.f32 %s192_s2, %s191_s10 }
  0x7e   :  { %s214_s14 = smul.f32 0.5, %s1700_s26  ;;  %v238_v59 = vstv %s211_s5  ;;  %s213_s25 = ssub.f32 %s1086_s1, %s212_s0  ;;  %v330_v60 = vadd.f32 %v1260_v21, %v237_v33  ;;  %v341_v63 = vmul.f32 %v339_v38, %v326_v52  ;;  %v303_v6 = vmul.f32 %v296_v56, %v296_v56  ;;  %v1409_v33 = vld [vmem:[#allocation11 + $0x50] sm:$0xff] }
  0x7f   :  { %v334_v62 = vadd.f32 %v333_v27, %v238_v59  ;;  %v232_v5 = vstv %s193_s19  ;;  %v304_v7 = vmul.f32 %v299_v57, %v299_v57  ;;  %v306_v8 = vmul.f32 %v302_v58, %v302_v58  ;;  %s217_s18 = ssub.f32 %s1090_s13, %s216_s9 }
  0x80   :  { %s215_s7 = ssub.f32 %s1088_s12, %s214_s14  ;;  %v239_v11 = vstv %s213_s25  ;;  %v342_v12 = vsub.f32 %v340_v47, %v341_v63  ;;  %v344_v14 = vmul.f32 %v339_v38, %v330_v60  ;;  %v387_v18 = vmul.f32 %v1235_v61, %v232_v5 }
  0x81   :  { %v347_v16 = vmul.f32 %v339_v38, %v334_v62  ;;  %s1335_s17 = sld [smem:[#allocation2 + $0xc]]  ;;  %v305_v10 = vadd.f32 %v304_v7, %v303_v6  ;;  %v241_v26 = vstv %s217_s18  ;;  %v373_v9 = vadd.f32 %v372_v42, %v239_v11  ;;  %v1394_v38 = vld [vmem:[#allocation10 + $0x20] sm:$0xff]  ;;  %v584_v6 = vld [vmem:[#allocation11 + $0x38] sm:$0xff] }
  0x82   :  { %v240_v25 = vstv %s215_s7  ;;  %s1337_s1 = sld [smem:[#allocation2 + $0xd]]  ;;  %v345_v21 = vsub.f32 %v343_v53, %v344_v14  ;;  %v349_v28 = vmul.f32 %v342_v12, %v342_v12  ;;  %v381_v29 = vadd.f32 %v380_v48, %v241_v26  ;;  %v582_v62 = vld [vmem:[#allocation11 + $0x30] sm:$0xff] }
  0x83   :  { %v377_v15 = vadd.f32 %v376_v32, %v240_v25  ;;  %v348_v27 = vsub.f32 %v346_v54, %v347_v16  ;;  %s1339_s12 = sld [smem:[#allocation2 + $0xe]]  ;;  %v1341_v13 = vadd.f32 %v306_v8, %v305_v10  ;;  %v388_v31 = vmul.f32 %v386_v55, %v373_v9  ;;  %v562_v54 = vld [vmem:[#allocation10 + $0x28] sm:$0xff] }
  0x84   :  { %v390_v20 = vmul.f32 %v1242_v4, %v232_v5  ;;  %s1345_s13 = sld [smem:[#allocation2 + $0xf]]  ;;  %v350_v35 = vmul.f32 %v345_v21, %v345_v21  ;;  %v393_v37 = vmul.f32 %v1279_v30, %v232_v5  ;;  %v394_v4 = vmul.f32 %v386_v55, %v381_v29 }
  0x85   :  { %v352_v24 = vmul.f32 %v348_v27, %v348_v27  ;;  %v391_v36 = vmul.f32 %v386_v55, %v377_v15  ;;  %s1348_s16 = sld [smem:[#allocation2 + $0x10]]  ;;  %821 = vrsqrt.f32 %v1341_v13  ;;  %v389_v61 = vsub.f32 %v387_v18, %v388_v31 }
  0x86   :  { %s1351_s4 = sld [smem:[#allocation7 + $0x3]]  ;;  %v351_v23 = vadd.f32 %v350_v35, %v349_v28  ;;  %v395_v40 = vsub.f32 %v393_v37, %v394_v4  ;;  %vm310_vm0 = vcmp.eq.f32.partialorder %v1341_v13, inf  ;;  %vm312_vm1 = vcmp.eq.f32.partialorder %v1341_v13, 0.0  ;;  %v1504_v35 = vld [vmem:[#allocation11 + $0x48] sm:$0xff] }
  0x87   :  { %s1701_s30 = sld [smem:[#allocation24_spill]]  ;;  %v392_v34 = vsub.f32 %v390_v20, %v391_v36  ;;  %v396_v17 = vmul.f32 %v389_v61, %v389_v61  ;;  %v549_v43 = vstv %s1335_s17  ;;  %v313_v46 = vand.u32 2147483648, %v1341_v13 }
  0x88   :  { %s1353_s3 = sld [smem:[#allocation7 + $0x4]]  ;;  %v1357_v30 = vadd.f32 %v352_v24, %v351_v23  ;;  %v399_v39 = vmul.f32 %v395_v40, %v395_v40  ;;  %v552_v47 = vstv %s1337_s1 }
  0x89   :  { %s1355_s28 = sld [smem:[#allocation7 + $0x5]]  ;;  %v397_v22 = vmul.f32 %v392_v34, %v392_v34  ;;  %v555_v52 = vstv %s1339_s12 }
  0x8a   :  { %s1359_s27 = sld [smem:[#allocation8 + $0x3]]  ;;  %823 = vrsqrt.f32 %v1357_v30  ;;  %v550_v49 = vstv %s1345_s13  ;;  %vm356_vm2 = vcmp.eq.f32.partialorder %v1357_v30, inf  ;;  %vm358_vm3 = vcmp.eq.f32.partialorder %v1357_v30, 0.0 }
  0x8b   :  { %s1361_s6 = sld [smem:[#allocation8 + $0x4]]  ;;  %v398_v41 = vadd.f32 %v397_v22, %v396_v17  ;;  %v553_v50 = vstv %s1348_s16  ;;  %v359_v57 = vand.u32 2147483648, %v1357_v30 }
  0x8c   :  { %s1702_s29 = sld [smem:[#allocation25_spill]] }
  0x8d   :  { %s1703_s23 = sld [smem:[#allocation26_spill]]  ;;  %s485_s20 = smul.f32 %s1351_s4, %s1701_s30  ;;  %v1370_v42 = vadd.f32 %v399_v39, %v398_v41  ;;  %v548_v19 = vstv %s1701_s30 }
  0x8e   :  { %s1364_s2 = sld [smem:[#allocation8 + $0x5]]  ;;  %s486_s24 = smul.f32 %s1353_s3, %s1335_s17 }
  0x8f   :  { %s1372_s22 = sld [smem:[#allocation2 + $0x11]]  ;;  %s488_s0 = smul.f32 %s1355_s28, %s1345_s13  ;;  %825 = vrsqrt.f32 %v1370_v42  ;;  %v406_v58 = vand.u32 2147483648, %v1370_v42  ;;  %vm403_vm4 = vcmp.eq.f32.partialorder %v1370_v42, inf  ;;  %vm405_vm5 = vcmp.eq.f32.partialorder %v1370_v42, 0.0 }
  0x90   :  { %s1380_s26 = smul.f32 %s1359_s27, %s1701_s30  ;;  %s487_s21 = sadd.f32 %s486_s24, %s485_s20 }
  0x91   :  { %s1415_s11 = smul.f32 %s1359_s27, %s1335_s17 }
  0x92   :  { %v551_v32 = vstv %s1702_s29  ;;  %s1392_s15 = smul.f32 %s1361_s6, %s1702_s29  ;;  %s1401_s10 = sadd.f32 %s488_s0, %s487_s21  ;;  %v524_v48 = vstv %s1380_s26  ;;  %v822_v56 = vpop.eup %821 }
  0x93   :  { %v554_v45 = vstv %s1703_s23  ;;  %v563_v55 = vmul.f32 %v1383_v44, %v524_v48  ;;  %s1429_s5 = smul.f32 %s1361_s6, %s1337_s1  ;;  %v309_v63 = vmul.f32 %v822_v56, %v1341_v13  ;;  %v1444_v5 = vstv %s1415_s11 }
  0x94   :  { %s1399_s8 = smul.f32 %s1364_s2, %s1703_s23  ;;  %s1419_s14 = sadd.f32 %s1392_s15, %s1380_s26  ;;  %v1422_v53 = vstv %s1392_s15  ;;  %v1447_v7 = vmul.f32 %v1406_v51, %v524_v48  ;;  %v1450_v8 = vmul.f32 %v1409_v33, %v524_v48  ;;  %v569_v16 = vmul.f32 %v1383_v44, %v1444_v5 }
  0x95   :  { %1704 = sst [smem:[#allocation27_spill]] %s1372_s22  ;;  %v564_v60 = vmul.f32 %v1394_v38, %v1422_v53  ;;  %s1439_s19 = smul.f32 %s1364_s2, %s1339_s12  ;;  %v1462_v11 = vstv %s1429_s5  ;;  %v311_v25 = vsel %vm310_vm0, %v1341_v13, %v309_v63  ;;  %v585_v9 = vmul.f32 %v582_v62, %v1422_v53 }
  0x96   :  { %s500_s9 = sadd.f32 %s1399_s8, %s1392_s15  ;;  %v526_v59 = vstv %s1399_s8  ;;  %s1455_s7 = smul.f32 %s1359_s27, %s1345_s13  ;;  %v570_v26 = vmul.f32 %v1394_v38, %v1462_v11  ;;  %v314_v15 = vsel %vm312_vm1, %v313_v46, %v311_v25  ;;  %v589_v61 = vmul.f32 %v582_v62, %v1462_v11 }
  0x97   :  { %s474_s25 = sadd.f32 %s1419_s14, %s1399_s8  ;;  %v565_v12 = vadd.f32 %v564_v60, %v563_v55  ;;  %v566_v14 = vmul.f32 %v562_v54, %v526_v59  ;;  %s1472_s27 = smul.f32 %s1361_s6, %s1348_s16  ;;  %v1477_v10 = vstv %s1439_s19  ;;  %v586_v28 = vmul.f32 %v584_v6, %v526_v59  ;;  %v824_v29 = vpop.eup %823 }
  0x98   :  { %s1459_s18 = sadd.f32 %s1429_s5, %s1415_s11  ;;  %s1486_s24 = smul.f32 %s1364_s2, %s1372_s22  ;;  %v1491_v21 = vstv %s1455_s7  ;;  %v572_v27 = vmul.f32 %v562_v54, %v1477_v10  ;;  %v316_v18 = vmul.f32 %v1060_v0, %v314_v15  ;;  %v571_v31 = vadd.f32 %v570_v26, %v569_v16 }
  0x99   :  { %s475_s0 = smul.f32 0.5, %s474_s25  ;;  %s1497_s21 = sadd.f32 %s1472_s27, %s1455_s7  ;;  %v1500_v13 = vstv %s1472_s27  ;;  %v575_v20 = vmul.f32 %v1383_v44, %v1491_v21  ;;  %v355_v24 = vmul.f32 %v824_v29, %v1357_v30  ;;  %v567_v0 = vadd.f32 %v566_v14, %v565_v12  ;;  %v678_v29 = vld [vmem:[#allocation11 + $0x58] sm:$0xff] }
  0x9a   :  { %1705 = sst [smem:[#allocation28_spill]] %s1459_s18  ;;  %v532_v36 = vstv %s1486_s24  ;;  %v576_v37 = vmul.f32 %v1394_v38, %v1500_v13  ;;  %s1516_s22 = smul.f32 0.5, %s500_s9  ;;  %v573_v23 = vadd.f32 %v572_v27, %v571_v31  ;;  %v590_v34 = vmul.f32 %v584_v6, %v1477_v10  ;;  %415 = vst [vmem:[#allocation14] sm:$0xff] %v316_v18 }
  0x9b   :  { %s478_s6 = sadd.f32 %s1459_s18, %s1439_s19  ;;  %v357_v4 = vsel %vm356_vm2, %v1357_v30, %v355_v24  ;;  %v578_v17 = vmul.f32 %v562_v54, %v532_v36  ;;  %v633_v22 = vmul.f32 %v1504_v35, %v526_v59  ;;  %v593_v44 = vmul.f32 %v582_v62, %v1500_v13 }
  0x9c   :  { %s506_s20 = sadd.f32 %s1486_s24, %s1472_s27  ;;  %v577_v40 = vadd.f32 %v576_v37, %v575_v20  ;;  %v360_v41 = vsel %vm358_vm3, %v359_v57, %v357_v4  ;;  %v594_v46 = vmul.f32 %v584_v6, %v532_v36  ;;  %v826_v38 = vpop.eup %825  ;;  %v536_v54 = vstv %s1401_s10 }
  0x9d   :  { %s479_s2 = smul.f32 0.5, %s478_s6  ;;  %s476_s25 = ssub.f32 %s1351_s4, %s475_s0  ;;  %v363_v48 = vmul.f32 %v1064_v1, %v360_v41  ;;  %v402_v56 = vmul.f32 %v826_v38, %v1370_v42  ;;  %v587_v59 = vadd.f32 %v586_v28, %v585_v9  ;;  %v591_v60 = vadd.f32 %v590_v34, %v589_v61 }
  0x9e   :  { %s1706_s6 = sadd.f32 %s1439_s19, %s1429_s5  ;;  %s1534_s9 = smul.f32 0.5, %s506_s20  ;;  %v579_v1 = vadd.f32 %v578_v17, %v577_v40  ;;  %v634_v63 = vadd.f32 %v633_v22, %v1447_v7  ;;  %v595_v12 = vadd.f32 %v594_v46, %v593_v44  ;;  %v641_v28 = vmul.f32 %v1504_v35, %v532_v36 }
  0x9f   :  { %s480_s27 = ssub.f32 %s1353_s3, %s479_s2  ;;  %v533_v39 = vstv %s476_s25  ;;  %s490_s20 = smul.f32 %s1351_s4, %s1702_s29  ;;  %v404_v6 = vsel %vm403_vm4, %v1370_v42, %v402_v56  ;;  %422 = vst [vmem:[#allocation14 + $0x8] sm:$0xff] %v363_v48  ;;  %v683_v46 = vmul.f32 %v1409_v33, %v1444_v5  ;;  %v684_v38 = vmul.f32 %v678_v29, %v1462_v11 }
  0xa0   :  { %s1527_s18 = smul.f32 0.5, %s1706_s6  ;;  %s482_s15 = sadd.f32 %s1497_s21, %s1486_s24  ;;  %v1541_v55 = vadd.f32 %v567_v0, %v533_v39  ;;  %v407_v7 = vsel %vm405_vm5, %v406_v58, %v404_v6  ;;  %v637_v58 = vmul.f32 %v1504_v35, %v1477_v10  ;;  %v688_v6 = vmul.f32 %v678_v29, %v1500_v13 }
  0xa1   :  { %s502_s5 = ssub.f32 %s1351_s4, %s1516_s22  ;;  %v534_v30 = vstv %s480_s27  ;;  %s491_s22 = smul.f32 %s1353_s3, %s1337_s1 }
  0xa2   :  { %s483_s0 = smul.f32 0.5, %s482_s15  ;;  %s505_s2 = ssub.f32 %s1353_s3, %s1527_s18  ;;  %v1548_v57 = vadd.f32 %v573_v23, %v534_v30  ;;  %v597_v62 = vmul.f32 %v1541_v55, %v548_v19  ;;  %v636_v19 = vmul.f32 %v1406_v51, %v1444_v5  ;;  %v602_v26 = vmul.f32 %v1541_v55, %v536_v54 }
  0xa3   :  { %s508_s25 = ssub.f32 %s1355_s28, %s1534_s9  ;;  %s493_s18 = smul.f32 %s1355_s28, %s1348_s16  ;;  %v539_v16 = vstv %s502_s5  ;;  %v644_v31 = vmul.f32 %v1541_v55, %v551_v32  ;;  %v687_v5 = vmul.f32 %v1409_v33, %v1491_v21 }
  0xa4   :  { %s484_s10 = ssub.f32 %s1355_s28, %s483_s0  ;;  %v598_v14 = vmul.f32 %v1548_v57, %v549_v43  ;;  %v540_v25 = vstv %s505_s2  ;;  %v410_v43 = vmul.f32 %v1068_v2, %v407_v7  ;;  %s495_s27 = smul.f32 %s1351_s4, %s1703_s23  ;;  %v640_v2 = vmul.f32 %v1406_v51, %v1491_v21 }
  0xa5   :  { %s492_s30 = sadd.f32 %s491_s22, %s490_s20  ;;  %v541_v15 = vstv %s508_s25  ;;  %s496_s15 = smul.f32 %s1353_s3, %s1339_s12  ;;  %v588_v18 = vadd.f32 %v587_v59, %v539_v16  ;;  %v645_v20 = vmul.f32 %v1548_v57, %v552_v47  ;;  %v592_v24 = vadd.f32 %v591_v60, %v540_v25 }
  0xa6   :  { %v535_v9 = vstv %s484_s10  ;;  %v599_v27 = vadd.f32 %v598_v14, %v597_v62  ;;  %s509_s17 = sadd.f32 %s1399_s8, %s1380_s26  ;;  %v596_v10 = vadd.f32 %v595_v12, %v541_v15  ;;  %s518_s5 = smul.f32 0.5, %s1419_s14  ;;  %430 = vst [vmem:[#allocation14 + $0x10] sm:$0xff] %v410_v43  ;;  %v605_v36 = vmul.f32 %v1548_v57, %v536_v54 }
  0xa7   :  { %v1579_v42 = vadd.f32 %v579_v1, %v535_v9  ;;  %s494_s6 = sadd.f32 %s493_s18, %s492_s30  ;;  %v646_v0 = vadd.f32 %v645_v20, %v644_v31  ;;  %v680_v47 = vmul.f32 %v678_v29, %v1422_v53  ;;  %v638_v23 = vadd.f32 %v637_v58, %v636_v19  ;;  %s522_s25 = smul.f32 0.5, %s1497_s21 }
  0xa8   :  { %s510_s26 = smul.f32 0.5, %s509_s17  ;;  %s512_s8 = sadd.f32 %s1439_s19, %s1415_s11  ;;  %v642_v61 = vadd.f32 %v641_v28, %v640_v2  ;;  %v685_v15 = vadd.f32 %v684_v38, %v683_v46 }
  0xa9   :  { %v600_v51 = vmul.f32 %v1579_v42, %v550_v49  ;;  %s515_s9 = sadd.f32 %s1486_s24, %s1455_s7  ;;  %v537_v35 = vstv %s494_s6  ;;  %v647_v32 = vmul.f32 %v1579_v42, %v553_v50  ;;  %v608_v49 = vmul.f32 %v1579_v42, %v536_v54  ;;  %s989_s24 = smov [#allocation15]  }
  0xaa   :  { %s1707_s20 = sld [smem:[#allocation28_spill]]  ;;  %s513_s29 = smul.f32 0.5, %s512_s8  ;;  %v649_v40 = vmul.f32 %v1541_v55, %v537_v35  ;;  %v652_v50 = vmul.f32 %v1548_v57, %v537_v35  ;;  %v655_v44 = vmul.f32 %v1579_v42, %v537_v35  ;;  %v681_v43 = vadd.f32 %v680_v47, %v1450_v8 }
  0xab   :  { %s511_s11 = ssub.f32 %s1351_s4, %s510_s26  ;;  %v601_v37 = vadd.f32 %v600_v51, %v599_v27  ;;  %s516_s1 = smul.f32 0.5, %s515_s9  ;;  %v648_v4 = vadd.f32 %v647_v32, %v646_v0 }
  0xac   :  { %s514_s13 = ssub.f32 %s1353_s3, %s513_s29  ;;  %s763_s0 = sshll.u32 %s989_s24, 4  ;;  %s764_s0 = int_to_ptr.vmem [resolvable:$true] %s763_s0 }
  0xad   :  { %v542_v34 = vstv %s511_s11  ;;  %v603_v53 = vmul.f32 %v601_v37, %v588_v18  ;;  %v606_v17 = vmul.f32 %v601_v37, %v592_v24  ;;  %s1708_s19 = sld [smem:[#allocation27_spill]]  ;;  %v609_v22 = vmul.f32 %v601_v37, %v596_v10  ;;  %p932_p12 = scmp.lt.s32.totalorder %s764_s0, %s764_s0 }
  0xae   :  { %s517_s7 = ssub.f32 %s1355_s28, %s516_s1  ;;  %v635_v41 = vadd.f32 %v634_v63, %v542_v34  ;;  %v543_v39 = vstv %s514_s13 }
  0xaf   :  { %s497_s2 = sadd.f32 %s496_s15, %s495_s27  ;;  %v604_v48 = vsub.f32 %v602_v26, %v603_v53  ;;  %v607_v30 = vsub.f32 %v605_v36, %v606_v17  ;;  %v610_v54 = vsub.f32 %v608_v49, %v609_v22  ;;  %v639_v59 = vadd.f32 %v638_v23, %v543_v39 }
  0xb0   :  { %s520_s16 = smul.f32 0.5, %s1707_s20  ;;  %v544_v56 = vstv %s517_s7  ;;  %s1630_s10 = ssub.f32 %s1351_s4, %s518_s5  ;;  %v650_v1 = vmul.f32 %v648_v4, %v635_v41 }
  0xb1   :  { %v643_v60 = vadd.f32 %v642_v61, %v544_v56  ;;  %v611_v11 = vmul.f32 %v604_v48, %v604_v48  ;;  %v612_v62 = vmul.f32 %v607_v30, %v607_v30  ;;  %v614_v63 = vmul.f32 %v610_v54, %v610_v54  ;;  %s1639_s4 = ssub.f32 %s1355_s28, %s522_s25 }
  0xb2   :  { %s1633_s21 = ssub.f32 %s1353_s3, %s520_s16  ;;  %v651_v12 = vsub.f32 %v649_v40, %v650_v1  ;;  %v653_v14 = vmul.f32 %v648_v4, %v639_v59  ;;  %v545_v25 = vstv %s1630_s10  ;;  %s927_s3 = scalar_lea.vmem %s764_s0, 768 }
  0xb3   :  { %s498_s22 = smul.f32 %s1355_s28, %s1708_s19  ;;  %v656_v19 = vmul.f32 %v648_v4, %v643_v60  ;;  %v556_v7 = vstv %s1708_s19  ;;  %v613_v16 = vadd.f32 %v612_v62, %v611_v11  ;;  %p928_p11 = scmp.ne.s32.totalorder %s764_s0, %s927_s3 }
  0xb4   :  { %v546_v26 = vstv %s1633_s21  ;;  %v654_v9 = vsub.f32 %v652_v50, %v653_v14  ;;  %v658_v21 = vmul.f32 %v651_v12, %v651_v12  ;;  %p933_p13 = scmp.lt.s32.totalorder %s927_s3, %s927_s3 }
  0xb5   :  { %s499_s14 = sadd.f32 %s498_s22, %s497_s2  ;;  %v657_v33 = vsub.f32 %v655_v44, %v656_v19 }
  0xb6   :  { %p934_p0 = por %p933_p13, %p932_p12 }
  0xb8   :  { %p935_p1 = pnand %p934_p0, %p928_p11 }
  0xba   :  { %938 = shalt.err (!%p935_p1)
}
  0xbb   :  { %s1709_s28 = smov 8   ;;  %s1710_s18 = smov 128   ;;  %v615_v8 = vadd.f32 %v614_v63, %v613_v16  ;;  %v689_v13 = vadd.f32 %v688_v6, %v687_v5  ;;  %v691_v27 = vmul.f32 %v1541_v55, %v554_v45  ;;  %v692_v58 = vmul.f32 %v1548_v57, %v555_v52  ;;  %v833_v54 = vld [vmem:[#allocation13 + $0x20] sm:$0xff] }
  0xbc   :  { %s1711_s27 = sld [smem:[#allocation30_spill]]  ;;  %v659_v2 = vmul.f32 %v654_v9, %v654_v9  ;;  %v661_v28 = vmul.f32 %v657_v33, %v657_v33  ;;  %v547_v29 = vstv %s1639_s4  ;;  %v694_v18 = vmul.f32 %v1579_v42, %v556_v7  ;;  %s990_s12 = smov [#allocation14]  }
  0xbd   :  { %827 = vrsqrt.f32 %v615_v8  ;;  %v538_v20 = vstv %s499_s14  ;;  %v693_v24 = vadd.f32 %v692_v58, %v691_v27  ;;  %v682_v10 = vadd.f32 %v681_v43, %v545_v25  ;;  %s751_s23 = sshll.u32 %s990_s12, 4  ;;  %s752_s23 = int_to_ptr.vmem [resolvable:$true] %s751_s23 }
  0xbe   :  { %v660_v31 = vadd.f32 %v659_v2, %v658_v21  ;;  %v686_v51 = vadd.f32 %v685_v15, %v546_v26  ;;  %v690_v35 = vadd.f32 %v689_v13, %v547_v29  ;;  %v696_v32 = vmul.f32 %v1541_v55, %v538_v20  ;;  %s947_s6 = scalar_lea.vmem %s752_s23, 768  ;;  %p952_p3 = scmp.lt.s32.totalorder %s752_s23, %s752_s23 }
  0xbf   :  { %v695_v0 = vadd.f32 %v694_v18, %v693_v24  ;;  %v699_v45 = vmul.f32 %v1548_v57, %v538_v20  ;;  %v702_v52 = vmul.f32 %v1579_v42, %v538_v20  ;;  %vm618_vm6 = vcmp.eq.f32.partialorder %v615_v8, inf  ;;  %p948_p2 = scmp.ne.s32.totalorder %s752_s23, %s947_s6  ;;  %p953_p4 = scmp.lt.s32.totalorder %s947_s6, %s947_s6 }
  0xc0   :  { %v662_v36 = vadd.f32 %v661_v28, %v660_v31  ;;  %v621_v22 = vand.u32 2147483648, %v615_v8  ;;  %vm620_vm7 = vcmp.eq.f32.partialorder %v615_v8, 0.0 }
  0xc1   :  { %v697_v47 = vmul.f32 %v695_v0, %v682_v10  ;;  %v700_v37 = vmul.f32 %v695_v0, %v686_v51  ;;  %v703_v49 = vmul.f32 %v695_v0, %v690_v35  ;;  %p954_p5 = por %p953_p4, %p952_p3 }
  0xc2   :  { %769 = dma.vmem_to_hbm [thread:$0]  %s764_s0, 768, %s1711_s27, [#allocation16], %s1710_s18, %s1710_s18, %s1709_s28   ;;  %829 = vrsqrt.f32 %v662_v36  ;;  %vm665_vm8 = vcmp.eq.f32.partialorder %v662_v36, inf  ;;  %v668_v46 = vand.u32 2147483648, %v662_v36  ;;  %vm667_vm9 = vcmp.eq.f32.partialorder %v662_v36, 0.0 }
  0xc3   :  { %v698_v23 = vsub.f32 %v696_v32, %v697_v47  ;;  %v701_v61 = vsub.f32 %v699_v45, %v700_v37  ;;  %v704_v34 = vsub.f32 %v702_v52, %v703_v49  ;;  %p955_p6 = pnand %p954_p5, %p948_p2 }
  0xc5   :  { %v705_v4 = vmul.f32 %v698_v23, %v698_v23  ;;  %v706_v40 = vmul.f32 %v701_v61, %v701_v61  ;;  %v708_v50 = vmul.f32 %v704_v34, %v704_v34 }
  0xc7   :  { %v707_v53 = vadd.f32 %v706_v40, %v705_v4 }
  0xc9   :  { %v709_v55 = vadd.f32 %v708_v50, %v707_v53 }
  0xca   :  { %v828_v17 = vpop.eup %827 }
  0xcb   :  { %v617_v41 = vmul.f32 %v828_v17, %v615_v8  ;;  %831 = vrsqrt.f32 %v709_v55  ;;  %vm712_vm10 = vcmp.eq.f32.partialorder %v709_v55, inf  ;;  %v715_v60 = vand.u32 2147483648, %v709_v55 }
  0xcc   :  { %vm714_vm11 = vcmp.eq.f32.partialorder %v709_v55, 0.0 }
  0xcd   :  { %v619_v57 = vsel %vm618_vm6, %v615_v8, %v617_v41 }
  0xce   :  { %v622_v42 = vsel %vm620_vm7, %v621_v22, %v619_v57 }
  0xcf   :  { %v830_v39 = vpop.eup %829  ;;  %v625_v44 = vmul.f32 %v1076_v3, %v622_v42  ;;  %v834_v3 = vld [vmem:[#allocation13 + $0x28] sm:$0xff] }
  0xd0   :  { %v664_v38 = vmul.f32 %v830_v39, %v662_v36 }
  0xd1   :  { %725 = vst [vmem:[#allocation14 + $0x18] sm:$0xff] %v625_v44 }
  0xd2   :  { %v666_v48 = vsel %vm665_vm8, %v662_v36, %v664_v38 }
  0xd3   :  { %v669_v30 = vsel %vm667_vm9, %v668_v46, %v666_v48 }
  0xd4   :  { %v672_v56 = vmul.f32 %v833_v54, %v669_v30 }
  0xd6   :  { %733 = vst [vmem:[#allocation14 + $0x20] sm:$0xff] %v672_v56 }
  0xd8   :  { %v832_v59 = vpop.eup %831 }
  0xd9   :  { %v711_v1 = vmul.f32 %v832_v59, %v709_v55 }
  0xdb   :  { %v713_v5 = vsel %vm712_vm10, %v709_v55, %v711_v1 }
  0xdc   :  { %v716_v11 = vsel %vm714_vm11, %v715_v60, %v713_v5 }
  0xdd   :  { %v719_v62 = vmul.f32 %v834_v3, %v716_v11 }
  0xdf   :  { %741 = vst [vmem:[#allocation14 + $0x28] sm:$0xff] %v719_v62 }
  0xe0   :  { %958 = shalt.err (!%p955_p6)
}
  0xe1   :  { %s1712_s8 = sld [smem:[#allocation29_spill]] }
  0xe7   :  { %757 = dma.vmem_to_hbm [thread:$0]  %s752_s23, 768, %s1712_s8, [#allocation4], %s1710_s18, %s1710_s18, %s1709_s28  }
  0xe8   :  { %977 = dma.done.wait [#allocation4], 768  }
  0xe9   :  { %978 = vsyncadd [#allocation4], 4294966528 }
  0xea   :  { %979 = dma.done.wait [#allocation16], 768  }
  0xeb   :  { %980 = vsyncadd [#allocation16], 4294966528 }
  0xec   :  { %776 = vsyncpa [#allocation3], 1 }
  0xed   :  { %777 = vsyncpa [#allocation12], 1 }
  0xee   :  { %778 = vsyncpa [#allocation4], 1 }
  0xef   :  { %779 = vsyncpa [#allocation16], 1 }
  0xf0   :  { %780 = vsyncpa [#allocation5], 1 }
  0xf1   :  { %781 = vsyncpa [#allocation6], 1 }
  0xf2   :  { %782 = vsyncpa [#allocation9], 1 }

</bundles_post_ra>
